<compile_context>
chip_gen: v7x
topology: tpu7x:2x2x1
jax: 0.10.0
libtpu: 0.0.40
codegen_flags: <defaults>
</compile_context>

<pallas_src>
import functools

import jax
import jax.numpy as jnp
from jax import lax
from jax.experimental import pallas as pl
from jax.experimental.pallas import tpu as pltpu


def _vmem_budget_bytes():
    """~75% of physical VMEM (v7x 64 MiB -> 48 MiB, v5e/v6e 128 MiB -> 96 MiB).

    Falls back to the v7x-safe value if the hardware query is unavailable.
    """
    try:
        cap = int(getattr(pltpu.get_tpu_info(), "vmem_capacity_bytes", 0))
    except Exception:  # non-TPU backend / old runtime
        cap = 0
    if cap <= 0:
        cap = 64 << 20
    return min((cap * 3) // 4, 96 << 20)


def _largest_tile(hw, limit):
    """Largest multiple-of-128 divisor of hw that is <= limit (None if none)."""
    t = (min(hw, limit) // 128) * 128
    while t >= 128:
        if hw % t == 0:
            return t
        t -= 128
    return None


def _pick_t_hw(hw, batch, max_rows):
    """Spatial tile size: divides hw exactly and is 128-aligned (or hw itself)."""
    if hw <= max_rows:
        t = hw
    else:
        # Fall back to the whole spatial extent if no 128-aligned divisor fits;
        # fine for typical power-of-two shapes, only odd huge HW would overshoot.
        t = _largest_tile(hw, max_rows) or hw
    # v7x megacore: keep at least 2 grid steps when we can split losslessly.
    if batch * (hw // t) < 2:
        t2 = _largest_tile(hw, hw // 2)
        if t2 is not None:
            t = t2
    return t


def _ema_vq_kernel(z_ref, enorm_t_ref, ee_ref, src_ref, q_ref, prob_ref, sqerr_ref):
    """Per-(batch, spatial-tile) kernel.

    z_ref:       (1, D, T) f32  NCHW input block (one batch, all channels, T spatial)
    enorm_t_ref: (D, K)    f32  L2-normalized codebook, transposed (resident)
    ee_ref:      (1, K)    f32  per-code ||e_norm||^2 (resident)
    src_ref:     (K, D)    f32  normalized z rows [0, K) = gather source (resident)
    q_ref:       (1, D, T) f32  gathered z_norm rows, back in NCHW layout
    prob_ref:    (1, T, K)      softmax(-distances)
    sqerr_ref:   (1, T, 1) f32  per-row sum((z_norm - q)^2) partials
    """
    eps = 1e-12

    # Channels-major (D, T) block -> (T, D) rows.  Small XLU transpose (XLU has
    # slack here); this replaces a full NCHW->NHWC HBM round trip in the wrapper.
    z = jnp.transpose(z_ref[0], (1, 0))                           # (T, D)

    # L2 normalize rows: x / max(||x||, eps) == x * rsqrt(max(ssq, eps^2)).
    ssq = jnp.sum(z * z, axis=1, keepdims=True)                   # (T, 1)
    z_norm = z * lax.rsqrt(jnp.maximum(ssq, eps * eps))           # EUP rsqrt

    # Distance cross term on the MXU.  f32 operands: the kernel is HBM-bound,
    # so the extra MXU passes are free and match the PyTorch f32 reference.
    cross = jnp.dot(z_norm, enorm_t_ref[...],
                    preferred_element_type=jnp.float32)           # (T, K)

    # neg = -(dist) + row-constant ||z_norm||^2:
    # argmin(dist) == argmax(neg) and softmax(-dist) == softmax(neg)
    # (row constants cancel exactly, incl. the eps-guarded all-zero-row case).
    neg = 2.0 * cross - ee_ref[...]                               # (T, K)

    # Softmax over codes (exact divide: rows sum to 1, matches torch.softmax).
    m = jnp.max(neg, axis=1, keepdims=True)                       # (T, 1)
    ex = jnp.exp(neg - m)
    denom = jnp.sum(ex, axis=1, keepdims=True)
    prob_ref[0] = (ex / denom).astype(prob_ref.dtype)

    # First-minimum argmin over dist == first-maximum argmax over neg.
    kk = neg.shape[1]
    iota_k = lax.broadcasted_iota(jnp.int32, neg.shape, 1)
    idx = jnp.min(jnp.where(neg == m, iota_k, kk), axis=1, keepdims=True)  # (T, 1)
    onehot = (iota_k == idx).astype(jnp.float32)                  # (T, K)

    # Gather rows of z_norm[:K] at idx (== F.embedding(indices, z_norm)) as an
    # exact one-hot selection matmul over the unpadded (K, D) source.
    emb_sel = jnp.dot(onehot, src_ref[...],
                      preferred_element_type=jnp.float32)         # (T, D)
    q_ref[0] = jnp.transpose(emb_sel, (1, 0))                     # back to (D, T)

    # Per-row commitment-loss partial sums (4 B/row of HBM; reduced in wrapper).
    diff = z_norm - emb_sel
    sqerr_ref[0] = jnp.sum(diff * diff, axis=1, keepdims=True)


@functools.partial(
    jax.jit, static_argnames=("beta", "t_hw", "vmem_limit_bytes", "prob_dtype"))
def _ema_vq_forward_impl(z_nchw, embeddings, *, beta, t_hw, vmem_limit_bytes,
                         prob_dtype):
    b, d, h, w = z_nchw.shape
    k = embeddings.shape[0]
    hw = h * w
    n = b * hw
    eps = 1e-12

    # ---- codebook-side work hoisted out of the per-tile path (tiny K x D) ----
    e = embeddings.astype(jnp.float32)
    e_norm = e * lax.rsqrt(
        jnp.maximum(jnp.sum(e * e, axis=1, keepdims=True), eps * eps))
    e_norm_t = jnp.transpose(e_norm, (1, 0))                  # (D, K): NN matmul in-kernel
    ee = jnp.sum(e_norm * e_norm, axis=1).reshape(1, k)       # per-code ||e_norm||^2
    codebook_sum = jnp.sum(jnp.abs(e))                        # sum(|embeddings|)

    # Gather source: F.embedding(indices, z_norm) reads rows [0, K) of the
    # NHWC-flattened, L2-normalized input.  Only ceil(K / HW) batches are
    # touched, so this transpose is tiny compared with the activation.
    z_bdhw = z_nchw.reshape(b, d, hw).astype(jnp.float32)     # free reshape (NCHW)
    nb = -(-k // hw)
    head = jnp.transpose(z_bdhw[:nb], (0, 2, 1)).reshape(nb * hw, d)[:k]
    src = head * lax.rsqrt(
        jnp.maximum(jnp.sum(head * head, axis=1, keepdims=True), eps * eps))

    grid = (b, hw // t_hw)
    q_bdhw, prob, sqerr = pl.pallas_call(
        _ema_vq_kernel,
        grid=grid,
        in_specs=[
            pl.BlockSpec((1, d, t_hw), lambda i, j: (i, 0, j)),   # z, NCHW block
            pl.BlockSpec((d, k), lambda i, j: (0, 0)),            # e_norm^T, resident
            pl.BlockSpec((1, k), lambda i, j: (0, 0)),            # ||e_norm||^2, resident
            pl.BlockSpec((k, d), lambda i, j: (0, 0)),            # gather source, resident
        ],
        out_specs=(
            pl.BlockSpec((1, d, t_hw), lambda i, j: (i, 0, j)),   # q, NCHW block
            pl.BlockSpec((1, t_hw, k), lambda i, j: (i, j, 0)),   # distance_prob
            pl.BlockSpec((1, t_hw, 1), lambda i, j: (i, j, 0)),   # per-row loss partials
        ),
        out_shape=(
            jax.ShapeDtypeStruct((b, d, hw), jnp.float32),
            jax.ShapeDtypeStruct((b, hw, k), prob_dtype),
            jax.ShapeDtypeStruct((b, hw, 1), jnp.float32),
        ),
        compiler_params=pltpu.CompilerParams(
            dimension_semantics=("parallel", "parallel"),   # shards across v7x's 2 TCs
            vmem_limit_bytes=vmem_limit_bytes,
        ),
    )(z_bdhw, e_norm_t, ee, src)

    commitment_loss = jnp.sum(sqerr) / float(n * d)
    output = {
        "commitment-loss": commitment_loss,
        "loss": beta * commitment_loss,
        "codebook-sum": codebook_sum,
    }
    q = q_bdhw.reshape(b, d, h, w)            # free reshape, already NCHW
    distance_prob = prob.reshape(n, k)        # free reshape (row-major)
    return q, output, distance_prob


def ema_vq_forward(z_nchw, embeddings, beta=0.25, block_rows=None,
                   prob_dtype=jnp.float32):
    """JAX/Pallas equivalent of EMAVectorQuantizer.forward (eval mode).

    z_nchw:     (B, D, H, W) float32 (PyTorch NCHW convention)
    embeddings: (K, D) float32 codebook buffer
    returns (q, output_dict, distance_prob) matching the PyTorch module.
    """
    b, d, h, w = z_nchw.shape
    k, dk = embeddings.shape
    if dk != d:
        raise ValueError("channel dim of z must equal embedding_dim")
    hw = h * w
    n = b * hw
    if n < k:
        raise ValueError(
            "EMAVectorQuantizer requires N = B*H*W >= n_codes because the "
            "module gathers rows of z_norm at code indices.")

    vmem_limit = _vmem_budget_bytes()
    # Per-spatial-row VMEM footprint: double-buffered blocks (z + q: d each,
    # prob: k, sqerr: 1) plus ~6 row-by-K and ~6 row-by-D f32 temporaries in
    # the kernel body; size the tile to roughly half the VMEM budget.
    per_row = 4 * (2 * (2 * d + k + 1) + 6 * (k + d))
    max_rows = max(128, min(8192, (vmem_limit // 2) // per_row))
    if block_rows is not None:
        max_rows = min(max_rows, int(block_rows))
    t_hw = _pick_t_hw(hw, b, max_rows)

    return _ema_vq_forward_impl(
        z_nchw, embeddings, beta=float(beta), t_hw=int(t_hw),
        vmem_limit_bytes=int(vmem_limit), prob_dtype=prob_dtype)


if __name__ == "__main__":
    # Module hyperparameters (consistent with the module's __init__).
    n_codes = 128
    embedding_dim = 32
    beta = 0.25

    # Input: NCHW, channels == embedding_dim.  N = B*H*W = 256 >= n_codes,
    # which the original module's F.embedding(indices, z_norm) requires.
    # HW = 128 keeps the spatial tile 128-aligned.
    B, H, W = 2, 8, 16

    key = jax.random.PRNGKey(0)
    kz, ke = jax.random.split(key)

    z = jax.random.normal(kz, (B, embedding_dim, H, W), dtype=jnp.float32)
    # nn.init.uniform_(weight, -1/n_codes, 1/n_codes)
    embeddings = jax.random.uniform(
        ke, (n_codes, embedding_dim), dtype=jnp.float32,
        minval=-1.0 / n_codes, maxval=1.0 / n_codes)

    q, out, prob = ema_vq_forward(z, embeddings, beta=beta)
    jax.block_until_ready((q, out, prob))

    # ---- pure-JAX reference of the module's eval-mode forward ----------------
    eps = 1e-12
    zf = jnp.transpose(z, (0, 2, 3, 1)).reshape(-1, embedding_dim)
    z_norm = zf / jnp.maximum(jnp.linalg.norm(zf, axis=1, keepdims=True), eps)
    e_norm = embeddings / jnp.maximum(
        jnp.linalg.norm(embeddings, axis=1, keepdims=True), eps)
    dist = (jnp.sum(z_norm ** 2, axis=1, keepdims=True)
            + jnp.sum(e_norm ** 2, axis=1)
            - 2.0 * jnp.dot(z_norm, e_norm.T,
                            precision=jax.lax.Precision.HIGHEST))
    prob_ref = jax.nn.softmax(-dist, axis=1)

    # Shape / sanity checks.
    assert q.shape == (B, embedding_dim, H, W)
    assert prob.shape == (B * H * W, n_codes)
    assert out["commitment-loss"].shape == ()
    assert bool(jnp.all(jnp.isfinite(q)))
    assert bool(jnp.all(jnp.isfinite(prob)))
    assert bool(jnp.isfinite(out["commitment-loss"]))
    # Softmax rows sum to 1 (exact divide in-kernel).
    assert bool(jnp.all(jnp.abs(jnp.sum(prob, axis=1) - 1.0) < 1e-3))
    # Kernel softmax matches the reference (tolerant of MXU matmul rounding).
    assert bool(jnp.max(jnp.abs(prob - prob_ref)) < 2e-2)
    # Self-consistency: q rows equal z_norm[:K] gathered at the kernel's own
    # argmax(prob) indices (the one-hot selection matmul is exact).
    idx_k = jnp.argmax(prob, axis=1)
    q_rows = jnp.transpose(q, (0, 2, 3, 1)).reshape(-1, embedding_dim)
    assert bool(jnp.max(jnp.abs(q_rows - z_norm[:n_codes][idx_k])) < 5e-3)

    print("KERNEL_OK")
</pallas_src>

<mosaic_0001>
module attributes {stable_mosaic.version = 11 : i64} {
  func.func @_ema_vq_kernel(%arg0: i32, %arg1: i32, %arg2: memref<1x32x128xf32, #tpu.memory_space<vmem>>, %arg3: memref<32x128xf32, #tpu.memory_space<vmem>>, %arg4: memref<1x128xf32, #tpu.memory_space<vmem>>, %arg5: memref<128x32xf32, #tpu.memory_space<vmem>>, %arg6: memref<1x32x128xf32, #tpu.memory_space<vmem>>, %arg7: memref<1x128x128xf32, #tpu.memory_space<vmem>>, %arg8: memref<1x128x1xf32, #tpu.memory_space<vmem>>) attributes {dimension_semantics = [#tpu.dimension_semantics<parallel>, #tpu.dimension_semantics<parallel>], iteration_bounds = array<i64: 2, 1>, scalar_prefetch = 0 : i64, scratch_operands = 0 : i64, tpu.core_type = #tpu.core_type<tc>, window_params = [{transform_indices = @transform_0, window_bounds = array<i64: 1, 32, 128>}, {pipeline_mode = #tpu.pipeline_mode<synchronous>, transform_indices = @transform_1, window_bounds = array<i64: 32, 128>}, {pipeline_mode = #tpu.pipeline_mode<synchronous>, transform_indices = @transform_2, window_bounds = array<i64: 1, 128>}, {pipeline_mode = #tpu.pipeline_mode<synchronous>, transform_indices = @transform_3, window_bounds = array<i64: 128, 32>}, {transform_indices = @transform_4, window_bounds = array<i64: 1, 32, 128>}, {transform_indices = @transform_5, window_bounds = array<i64: 1, 128, 128>}, {transform_indices = @transform_6, window_bounds = array<i64: 1, 128, 1>}]} {
    %c0 = arith.constant 0 : index
    %c0_0 = arith.constant 0 : index
    %c0_1 = arith.constant 0 : index
    %0 = vector.load %arg2[%c0, %c0_0, %c0_1] : memref<1x32x128xf32, #tpu.memory_space<vmem>>, vector<1x32x128xf32>
    %1 = vector.shape_cast %0 : vector<1x32x128xf32> to vector<32x128xf32>
    %2 = tpu.transpose %1, [1, 0] : vector<32x128xf32> -> vector<128x32xf32>
    %3 = arith.mulf %2, %2 : vector<128x32xf32>
    %cst = arith.constant dense<0.000000e+00> : vector<128xf32>
    %4 = vector.multi_reduction <add>, %3, %cst [1] : vector<128x32xf32> to vector<128xf32>
    %5 = vector.shape_cast %4 : vector<128xf32> to vector<128x1xf32>
    %cst_2 = arith.constant 1.000000e-24 : f32
    %6 = vector.broadcast %cst_2 : f32 to vector<128x1xf32>
    %7 = arith.maximumf %5, %6 : vector<128x1xf32>
    %8 = math.rsqrt %7 : vector<128x1xf32>
    %9 = vector.broadcast %8 : vector<128x1xf32> to vector<128x32xf32>
    %10 = arith.mulf %2, %9 : vector<128x32xf32>
    %c0_3 = arith.constant 0 : index
    %c0_4 = arith.constant 0 : index
    %11 = vector.load %arg3[%c0_3, %c0_4] : memref<32x128xf32, #tpu.memory_space<vmem>>, vector<32x128xf32>
    %cst_5 = arith.constant dense<0.000000e+00> : vector<128x128xf32>
    %12 = tpu.matmul %10, %11, %cst_5 {dimension_numbers = #tpu.dot_dimension_numbers<[1], [0], [0], [1], [0, 0, 1, 1], [], []>} : vector<128x32xf32>, vector<32x128xf32>, vector<128x128xf32> -> vector<128x128xf32>
    %cst_6 = arith.constant 2.000000e+00 : f32
    %13 = vector.broadcast %cst_6 : f32 to vector<128x128xf32>
    %14 = arith.mulf %13, %12 : vector<128x128xf32>
    %c0_7 = arith.constant 0 : index
    %c0_8 = arith.constant 0 : index
    %15 = vector.load %arg4[%c0_7, %c0_8] : memref<1x128xf32, #tpu.memory_space<vmem>>, vector<1x128xf32>
    %16 = vector.broadcast %15 : vector<1x128xf32> to vector<128x128xf32>
    %17 = arith.subf %14, %16 : vector<128x128xf32>
    %cst_9 = arith.constant dense<0xFF800000> : vector<128xf32>
    %18 = vector.multi_reduction <maximumf>, %17, %cst_9 [1] : vector<128x128xf32> to vector<128xf32>
    %19 = vector.shape_cast %18 : vector<128xf32> to vector<128x1xf32>
    %20 = vector.broadcast %19 : vector<128x1xf32> to vector<128x128xf32>
    %21 = arith.subf %17, %20 : vector<128x128xf32>
    %22 = math.exp %21 : vector<128x128xf32>
    %cst_10 = arith.constant dense<0.000000e+00> : vector<128xf32>
    %23 = vector.multi_reduction <add>, %22, %cst_10 [1] : vector<128x128xf32> to vector<128xf32>
    %24 = vector.shape_cast %23 : vector<128xf32> to vector<128x1xf32>
    %25 = vector.broadcast %24 : vector<128x1xf32> to vector<128x128xf32>
    %26 = arith.divf %22, %25 : vector<128x128xf32>
    %c0_11 = arith.constant 0 : index
    %c0_12 = arith.constant 0 : index
    %c0_13 = arith.constant 0 : index
    %27 = vector.load %arg7[%c0_11, %c0_12, %c0_13] : memref<1x128x128xf32, #tpu.memory_space<vmem>>, vector<1x128x128xf32>
    %28 = vector.shape_cast %27 : vector<1x128x128xf32> to vector<128x128xf32>
    %29 = vector.shape_cast %26 : vector<128x128xf32> to vector<1x128x128xf32>
    tpu.vector_store %arg7[%c0_11, %c0_12, %c0_13], %29 {strides = array<i32>} : memref<1x128x128xf32, #tpu.memory_space<vmem>>, vector<1x128x128xf32>,
    %30 = tpu.iota {dimensions = array<i32: 1>} : vector<128x128xi32>
    %31 = vector.broadcast %19 : vector<128x1xf32> to vector<128x128xf32>
    %32 = arith.cmpf oeq, %17, %31 : vector<128x128xf32>
    %c128_i32 = arith.constant 128 : i32
    %33 = vector.broadcast %c128_i32 : i32 to vector<128x128xi32>
    %34 = arith.select %32, %30, %33 : vector<128x128xi1>, vector<128x128xi32>
    %cst_14 = arith.constant dense<2147483647> : vector<128xi32>
    %35 = vector.multi_reduction <minsi>, %34, %cst_14 [1] : vector<128x128xi32> to vector<128xi32>
    %36 = vector.shape_cast %35 : vector<128xi32> to vector<128x1xi32>
    %37 = vector.broadcast %36 : vector<128x1xi32> to vector<128x128xi32>
    %38 = arith.cmpi eq, %30, %37 : vector<128x128xi32>
    %39 = arith.extui %38 : vector<128x128xi1> to vector<128x128xi32>
    %40 = arith.sitofp %39 : vector<128x128xi32> to vector<128x128xf32>
    %c0_15 = arith.constant 0 : index
    %c0_16 = arith.constant 0 : index
    %41 = vector.load %arg5[%c0_15, %c0_16] : memref<128x32xf32, #tpu.memory_space<vmem>>, vector<128x32xf32>
    %cst_17 = arith.constant dense<0.000000e+00> : vector<128x32xf32>
    %42 = tpu.matmul %40, %41, %cst_17 {dimension_numbers = #tpu.dot_dimension_numbers<[1], [0], [0], [1], [0, 0, 1, 1], [], []>} : vector<128x128xf32>, vector<128x32xf32>, vector<128x32xf32> -> vector<128x32xf32>
    %43 = tpu.transpose %42, [1, 0] : vector<128x32xf32> -> vector<32x128xf32>
    %c0_18 = arith.constant 0 : index
    %c0_19 = arith.constant 0 : index
    %c0_20 = arith.constant 0 : index
    %44 = vector.load %arg6[%c0_18, %c0_19, %c0_20] : memref<1x32x128xf32, #tpu.memory_space<vmem>>, vector<1x32x128xf32>
    %45 = vector.shape_cast %44 : vector<1x32x128xf32> to vector<32x128xf32>
    %46 = vector.shape_cast %43 : vector<32x128xf32> to vector<1x32x128xf32>
    tpu.vector_store %arg6[%c0_18, %c0_19, %c0_20], %46 {strides = array<i32>} : memref<1x32x128xf32, #tpu.memory_space<vmem>>, vector<1x32x128xf32>,
    %47 = arith.subf %10, %42 : vector<128x32xf32>
    %48 = arith.mulf %47, %47 : vector<128x32xf32>
    %cst_21 = arith.constant dense<0.000000e+00> : vector<128xf32>
    %49 = vector.multi_reduction <add>, %48, %cst_21 [1] : vector<128x32xf32> to vector<128xf32>
    %50 = vector.shape_cast %49 : vector<128xf32> to vector<128x1xf32>
    %c0_22 = arith.constant 0 : index
    %c0_23 = arith.constant 0 : index
    %c0_24 = arith.constant 0 : index
    %51 = vector.load %arg8[%c0_22, %c0_23, %c0_24] : memref<1x128x1xf32, #tpu.memory_space<vmem>>, vector<1x128x1xf32>
    %52 = vector.shape_cast %51 : vector<1x128x1xf32> to vector<128x1xf32>
    %53 = vector.shape_cast %50 : vector<128x1xf32> to vector<1x128x1xf32>
    tpu.vector_store %arg8[%c0_22, %c0_23, %c0_24], %53 {strides = array<i32>} : memref<1x128x1xf32, #tpu.memory_space<vmem>>, vector<1x128x1xf32>,
    return
  }
  func.func @transform_0(%arg0: i32, %arg1: i32) -> (i32, i32, i32) {
    %c0_i32 = arith.constant 0 : i32
    %c0_i32_0 = arith.constant 0 : i32
    return %arg0, %c0_i32, %arg1 : i32, i32, i32
  }
  func.func @transform_1(%arg0: i32, %arg1: i32) -> (i32, i32) {
    %c0_i32 = arith.constant 0 : i32
    %c0_i32_0 = arith.constant 0 : i32
    %c0_i32_1 = arith.constant 0 : i32
    return %c0_i32, %c0_i32_0 : i32, i32
  }
  func.func @transform_2(%arg0: i32, %arg1: i32) -> (i32, i32) {
    %c0_i32 = arith.constant 0 : i32
    %c0_i32_0 = arith.constant 0 : i32
    %c0_i32_1 = arith.constant 0 : i32
    return %c0_i32, %c0_i32_0 : i32, i32
  }
  func.func @transform_3(%arg0: i32, %arg1: i32) -> (i32, i32) {
    %c0_i32 = arith.constant 0 : i32
    %c0_i32_0 = arith.constant 0 : i32
    %c0_i32_1 = arith.constant 0 : i32
    return %c0_i32, %c0_i32_0 : i32, i32
  }
  func.func @transform_4(%arg0: i32, %arg1: i32) -> (i32, i32, i32) {
    %c0_i32 = arith.constant 0 : i32
    %c0_i32_0 = arith.constant 0 : i32
    return %arg0, %c0_i32, %arg1 : i32, i32, i32
  }
  func.func @transform_5(%arg0: i32, %arg1: i32) -> (i32, i32, i32) {
    %c0_i32 = arith.constant 0 : i32
    %c0_i32_0 = arith.constant 0 : i32
    return %arg0, %arg1, %c0_i32 : i32, i32, i32
  }
  func.func @transform_6(%arg0: i32, %arg1: i32) -> (i32, i32, i32) {
    %c0_i32 = arith.constant 0 : i32
    %c0_i32_0 = arith.constant 0 : i32
    return %arg0, %arg1, %c0_i32 : i32, i32, i32
  }
}

</mosaic_0001>

<bundles_post_ra>
// kernel: _ema_vq_forward_impl.1
= control target key start
LH: loop header
LB: loop body
LE: loop exit
PB: predicated region body
PF: predicated region fallthrough
CT: control target
= control target key end

     0   :  { %12 = vsyncpa [#allocation3], 0  ;;  %s3088_s0 = inlined_call_operand.vmem [shape: f32[2,32,128], index: 0, kind: input, shape index: {}]   ;;  %s3089_s1 = inlined_call_operand.vmem [shape: f32[32,128], index: 1, kind: input, shape index: {}]   ;;  %s3090_s2 = inlined_call_operand.vmem [shape: f32[1,128], index: 2, kind: input, shape index: {}]   ;;  %s3091_s3 = inlined_call_operand.vmem [shape: f32[128,32], index: 3, kind: input, shape index: {}]   ;;  %s3092_s4 = inlined_call_operand.vmem [shape: f32[2,32,128], index: 4, kind: output, shape index: {0}]   ;;  %s3093_s5 = inlined_call_operand.hbm [shape: f32[2,128,128], index: 5, kind: output, shape index: {1}]   ;;  %s3094_s6 = inlined_call_operand.vmem [shape: f32[2,128,1], index: 6, kind: output, shape index: {2}]  }
   0x1   :  { %14 = vsyncpa [#allocation3 + $0x1], 0  ;;  %s2197_s21 = smov 0   ;;  %s2199_s22 = smov 0  }
   0x2   :  { %s2201_s23 = smov 0   ;;  %s2203_s24 = smov 0  }
   0x3   :  { %s2205_s25 = smov 0   ;;  %s2207_s26 = smov 0  }
   0x4 LB: > { %s1657_s27 = sadd.s32 4294967295, %s2156_s26   ;;  %s1658_s28 = sadd.s32 4294967294, %s2156_s26   ;;  %s2156_s26 = sphi %s2207_s26, %s20_s26   ;;  %s2152_s25 = sphi %s2205_s25, %s3180_s25   ;;  %s2148_s24 = sphi %s2203_s24, %s3179_s24   ;;  %s2144_s23 = sphi %s2201_s23, %s3178_s23   ;;  %s2140_s22 = sphi %s2199_s22, %s3177_s22   ;;  %s2136_s21 = sphi %s2197_s21, %s3176_s21  }
   0x5   : > { %s32_s29 = sadd.s32 1, %s2152_s25  ;;  %s160_s30 = sadd.s32 1, %s2144_s23 }
   0x6   : > { %p34_p0 = scmp.ge.s32.totalorder %s32_s29, 2  ;;  %p170_p1 = scmp.ne.s32.totalorder %s2144_s23, %s2140_s22 }
   0x7   : > { %p171_p2 = scmp.eq.s32.totalorder %s1657_s27, 1  ;;  %p176_p3 = scmp.ne.s32.totalorder %s2140_s22, %s2136_s21 }
   0x8   : > { %s3182_s29 = smov (%p34_p0, %s32_s29), 0  ;;  %p177_p5 = scmp.eq.s32.totalorder %s1658_s28, 1 }
   0x9   : > { %p2237_p4 = por %p171_p2, %p170_p1  ;;  %s155_s8 = ssub.s32 %s2152_s25, %s3182_s29 }
   0xa   : > { %p1661_p6 = scmp.ge.s32.totalorder %s2156_s26, 1  ;;  %p158_p7 = scmp.eq.s32.totalorder %s155_s8, 0 }
   0xb   : > { %p2244_p8 = por %p177_p5, %p176_p3  ;;  %p243_p9 = scmp.lt.s32.totalorder %s2156_s26, 3 }
   0xc   : > { %s2250_s10 = scalar_select %p158_p7, %s2144_s23, %s160_s30  }
   0xd   : > { %p244_p10 = pnand %p1661_p6, %p243_p9 }
   0xf   : > { %247 = sbr.rel (%p244_p10) target bundleno = 1441 (0x5a1), region = 36 }
  0x16   : > { %p293_p11 = scmp.lt.s32.totalorder %s2148_s24, 1  ;;  %vm372_vm0 = vcmask 261120   ;;  %v469_v24 = vld [vmem:[%s3089_s1] sm:$0xff]  ;;  %v470_v25 = vld [vmem:[%s3089_s1 + $0x8] sm:$0xff]  ;;  %v471_v30 = vld [vmem:[%s3089_s1 + $0x10] sm:$0xff]  ;;  %s279_s28 = sand.u32 1, %s2140_s22  }
  0x17   : > { %v1867_v27 = vpack.c.bf16 %v470_v25, %v469_v24  ;;  %v472_v31 = vld [vmem:[%s3089_s1 + $0x18] sm:$0xff]  ;;  %s1662_s30 = sshll.u32 %s279_s28, 7  ;;  %s1726_s13 = sshll.u32 %s2148_s24, 11 }
  0x18   : > { %s2254_s11 = scalar_select %p293_p11, %s2148_s24, 1  ;;  %v1871_v33 = vpack.c.bf16 %v472_v31, %v471_v30 }
  0x19   : > { %1868 = vmatprep.subr.bf16.mxu0 %v1867_v27  ;;  %s2923_s8 = scalar_lea.vmem [#allocation2], %s1662_s30  ;;  %s2993_s17 = scalar_lea.hbm %s3093_s5, %s1726_s13 }
  0x1a   : > { %s1723_s12 = sshll.u32 %s2254_s11, 5  ;;  %1870 = vmatpush3.bf16.msra.mxu0 %v1867_v27  ;;  %s1501_s14 = sshll.u32 %s2923_s8, 4  ;;  %s2995_s14 = int_to_ptr.vmem [resolvable:$true] %s1501_s14 }
  0x1b   : > { %s300_s15 = scalar_lea.vmem %s3088_s0, %s1723_s12  ;;  %1872 = vmatprep.subr.bf16.mxu0 %v1871_v33  ;;  %s2999_s18 = scalar_lea.sflag [#allocation3], %s279_s28 }
  0x1c   : > { %v320_v0 = vld [vmem:[%s300_s15] sm:$0xff]  ;;  %v321_v1 = vld [vmem:[%s300_s15 + $0x8] sm:$0xff]  ;;  %v322_v2 = vld [vmem:[%s300_s15 + $0x10] sm:$0xff]  ;;  %s2078_s19 = scalar_lea.vmem %s2995_s14, 2048  ;;  %s2159_s24 = smov [#allocation2]  }
  0x1d   : > { %324 = vxpose.xlu0.b32.start [1/4] (short) %v320_v0, 128  ;;  %v323_v3 = vld [vmem:[%s300_s15 + $0x18] sm:$0xff]  ;;  %p2079_p12 = scmp.ne.s32.totalorder %s2995_s14, %s2078_s19  ;;  %s2082_s20 = sshll.u32 %s2159_s24, 4  ;;  %s2083_s20 = int_to_ptr.vmem [resolvable:$false] %s2082_s20 }
  0x1e   : > { %1874 = vmatpush3.bf16.msra.mxu0 %v1871_v33  ;;  %s2084_s27 = scalar_lea.vmem %s2083_s20, 4096  ;;  %p2085_p1 = scmp.lt.s32.totalorder %s2995_s14, %s2083_s20 }
  0x1f   : > { %p2080_p13 = pnand %p2079_p12, %p2237_p4  ;;  %p2086_p2 = scmp.lt.s32.totalorder %s2084_s27, %s2078_s19 }
  0x21   : > { %325 = vxpose.xlu0.b32.cont [2/4] (short) %v321_v1, 128  ;;  %p2081_p0 = pneg %p2080_p13  ;;  %p2087_p3 = por %p2086_p2, %p2085_p1 }
  0x23   : > { %p2088_p5 = pnand %p2087_p3, %p2081_p0 }
  0x25   : > { %326 = vxpose.xlu0.b32.cont [3/4] (short) %v322_v2, 128 }
  0x29   : > { %327 = vxpose.xlu0.b32.end [4/4] (short) %v323_v3, 128 }
  0x9d   : > { %v2262_v4 = vpop.trf.xlu0 }
  0x9e   : > { %v356_v5 = vmul.f32 %v2262_v4, %v2262_v4 }
  0xa0   : > { %v373_v6 = vsel %vm372_vm0, %v356_v5, 0.0 }
  0xa1   : > { %374 = vadd.xlane.f32.xlu1 %v373_v6  ;;  %v2267_v7 = vpop.trf.xlu0 }
  0xa2   : > { %v357_v8 = vmul.f32 %v2267_v7, %v2267_v7 }
  0xa4   : > { %v376_v9 = vsel %vm372_vm0, %v357_v8, 0.0 }
  0xa5   : > { %377 = vadd.xlane.f32.xlu1 %v376_v9  ;;  %v2272_v10 = vpop.trf.xlu0 }
  0xa6   : > { %v358_v11 = vmul.f32 %v2272_v10, %v2272_v10 }
  0xa8   : > { %v379_v12 = vsel %vm372_vm0, %v358_v11, 0.0 }
  0xa9   : > { %380 = vadd.xlane.f32.xlu1 %v379_v12  ;;  %v2277_v13 = vpop.trf.xlu0 }
  0xaa   : > { %v359_v14 = vmul.f32 %v2277_v13, %v2277_v13 }
  0xac   : > { %v382_v15 = vsel %vm372_vm0, %v359_v14, 0.0 }
  0xad   : > { %383 = vadd.xlane.f32.xlu1 %v382_v15  ;;  %v2282_v16 = vpop.trf.xlu0 }
  0xae   : > { %v360_v17 = vmul.f32 %v2282_v16, %v2282_v16 }
  0xb0   : > { %v385_v18 = vsel %vm372_vm0, %v360_v17, 0.0 }
  0xb1   : > { %386 = vadd.xlane.f32.xlu0 %v385_v18  ;;  %v2287_v19 = vpop.trf.xlu0 }
  0xb2   : > { %v361_v20 = vmul.f32 %v2287_v19, %v2287_v19 }
  0xb4   : > { %v388_v21 = vsel %vm372_vm0, %v361_v20, 0.0 }
  0xb5   : > { %389 = vadd.xlane.f32.xlu1 %v388_v21  ;;  %v2292_v22 = vpop.trf.xlu0 }
  0xb6   : > { %v362_v23 = vmul.f32 %v2292_v22, %v2292_v22 }
  0xb8   : > { %v391_v26 = vsel %vm372_vm0, %v362_v23, 0.0 }
  0xb9   : > { %392 = vadd.xlane.f32.xlu1 %v391_v26  ;;  %v2303_v28 = vpop.trf.xlu0 }
  0xba   : > { %v363_v29 = vmul.f32 %v2303_v28, %v2303_v28 }
  0xbc   : > { %v394_v32 = vsel %vm372_vm0, %v363_v29, 0.0 }
  0xbd   : > { %395 = vadd.xlane.f32.xlu1 %v394_v32  ;;  %v2314_v34 = vpop.trf.xlu0 }
  0xbe   : > { %v364_v35 = vmul.f32 %v2314_v34, %v2314_v34 }
  0xc0   : > { %v397_v36 = vsel %vm372_vm0, %v364_v35, 0.0 }
  0xc1   : > { %398 = vadd.xlane.f32.xlu1 %v397_v36  ;;  %v2319_v37 = vpop.trf.xlu0 }
  0xc2   : > { %v365_v38 = vmul.f32 %v2319_v37, %v2319_v37 }
  0xc4   : > { %v400_v39 = vsel %vm372_vm0, %v365_v38, 0.0 }
  0xc5   : > { %401 = vadd.xlane.f32.xlu1 %v400_v39  ;;  %v2324_v40 = vpop.trf.xlu0 }
  0xc6   : > { %v366_v41 = vmul.f32 %v2324_v40, %v2324_v40 }
  0xc8   : > { %v403_v42 = vsel %vm372_vm0, %v366_v41, 0.0 }
  0xc9   : > { %404 = vadd.xlane.f32.xlu1 %v403_v42  ;;  %v2329_v43 = vpop.trf.xlu0 }
  0xca   : > { %v367_v44 = vmul.f32 %v2329_v43, %v2329_v43 }
  0xcc   : > { %v406_v45 = vsel %vm372_vm0, %v367_v44, 0.0 }
  0xcd   : > { %407 = vadd.xlane.f32.xlu1 %v406_v45  ;;  %v2334_v46 = vpop.trf.xlu0 }
  0xce   : > { %v368_v47 = vmul.f32 %v2334_v46, %v2334_v46 }
  0xd0   : > { %v409_v48 = vsel %vm372_vm0, %v368_v47, 0.0 }
  0xd1   : > { %410 = vadd.xlane.f32.xlu1 %v409_v48  ;;  %v2339_v49 = vpop.trf.xlu0 }
  0xd2   : > { %v369_v50 = vmul.f32 %v2339_v49, %v2339_v49 }
  0xd4   : > { %v412_v51 = vsel %vm372_vm0, %v369_v50, 0.0 }
  0xd5   : > { %413 = vadd.xlane.f32.xlu1 %v412_v51  ;;  %v2344_v52 = vpop.trf.xlu0 }
  0xd6   : > { %v370_v53 = vmul.f32 %v2344_v52, %v2344_v52 }
  0xd8   : > { %v415_v54 = vsel %vm372_vm0, %v370_v53, 0.0 }
  0xd9   : > { %416 = vadd.xlane.f32.xlu1 %v415_v54  ;;  %v2349_v55 = vpop.trf.xlu0 }
  0xda   : > { %v371_v56 = vmul.f32 %v2349_v55, %v2349_v55 }
  0xdc   : > { %v418_v57 = vsel %vm372_vm0, %v371_v56, 0.0 }
  0xdd   : > { %419 = vadd.xlane.f32.xlu1 %v418_v57 }
 0x12e   : > { %v375_v58 = vpop.xlane.xlu1 %374 }
 0x12f   : > { %v421_v59 = vmax.f32 %v375_v58, 1e-24 }
 0x131   : > { %1982 = vrsqrt.f32 %v421_v59 }
 0x132   : > { %v378_v60 = vpop.xlane.xlu1 %377 }
 0x133   : > { %v422_v61 = vmax.f32 %v378_v60, 1e-24 }
 0x135   : > { %1984 = vrsqrt.f32 %v422_v61 }
 0x136   : > { %v381_v62 = vpop.xlane.xlu1 %380 }
 0x137   : > { %v423_v63 = vmax.f32 %v381_v62, 1e-24 }
 0x139   : > { %1986 = vrsqrt.f32 %v423_v63 }
 0x13a   : > { %v384_v0 = vpop.xlane.xlu1 %383 }
 0x13b   : > { %v1983_v1 = vpop.eup %1982  ;;  %v424_v2 = vmax.f32 %v384_v0, 1e-24 }
 0x13c   : > { %v2355_v3 = vmul.f32 %v1983_v1, %v2262_v4 }
 0x13d   : > { %1988 = vrsqrt.f32 %v424_v2 }
 0x13e   : > { %3124 = vst [vmem:[#allocation5_spill] sm:$0xff] %v2355_v3  ;;  %1787 = vmatprep.mubr.msk.f32.mxu0 %vm372_vm0, %v2355_v3  ;;  %v387_v5 = vpop.xlane.xlu0 %386 }
 0x13f   : > { %v1985_v6 = vpop.eup %1984  ;;  %v425_v8 = vmax.f32 %v387_v5, 1e-24 }
 0x140   : > { %v2360_v9 = vmul.f32 %v1985_v6, %v2267_v7 }
 0x141   : > { %1990 = vrsqrt.f32 %v425_v8 }
 0x142   : > { %3125 = vst [vmem:[#allocation6_spill] sm:$0xff] %v2360_v9  ;;  %1788 = vmatmul.mubr.msk.f32.vlgmr.msra.gmra.mrb[0].mxu0 %vm372_vm0, %v2360_v9  ;;  %v390_v11 = vpop.xlane.xlu1 %389 }
 0x143   : > { %v1987_v12 = vpop.eup %1986  ;;  %v426_v14 = vmax.f32 %v390_v11, 1e-24 }
 0x144   : > { %v2365_v4 = vmul.f32 %v1987_v12, %v2272_v10 }
 0x145   : > { %1992 = vrsqrt.f32 %v426_v14 }
 0x146   : > { %3126 = vst [vmem:[#allocation7_spill] sm:$0xff] %v2365_v4  ;;  %1790 = vmatprep.mubr.msk.f32.mxu0 %vm372_vm0, %v2365_v4  ;;  %v393_v15 = vpop.xlane.xlu1 %392 }
 0x147   : > { %v1989_v17 = vpop.eup %1988  ;;  %v427_v18 = vmax.f32 %v393_v15, 1e-24 }
 0x148   : > { %v2370_v7 = vmul.f32 %v1989_v17, %v2277_v13 }
 0x149   : > { %1994 = vrsqrt.f32 %v427_v18 }
 0x14a   : > { %3127 = vst [vmem:[#allocation8_spill] sm:$0xff] %v2370_v7  ;;  %1791 = vmatmul.mubr.msk.f32.gmra.mrb[2].mxu0 %vm372_vm0, %v2370_v7  ;;  %v396_v20 = vpop.xlane.xlu1 %395 }
 0x14b   : > { %v1991_v21 = vpop.eup %1990  ;;  %v428_v23 = vmax.f32 %v396_v20, 1e-24 }
 0x14c   : > { %v2375_v10 = vmul.f32 %v1991_v21, %v2282_v16 }
 0x14d   : > { %1996 = vrsqrt.f32 %v428_v23 }
 0x14e   : > { %3128 = vst [vmem:[#allocation9_spill] sm:$0xff] %v2375_v10  ;;  %v399_v24 = vpop.xlane.xlu1 %398  ;;  %1793 = vmatprep.mubr.msk.f32.mxu0 %vm372_vm0, %v2375_v10 }
 0x14f   : > { %v1993_v25 = vpop.eup %1992  ;;  %v429_v26 = vmax.f32 %v399_v24, 1e-24 }
 0x150   : > { %v2380_v13 = vmul.f32 %v1993_v25, %v2287_v19 }
 0x151   : > { %1998 = vrsqrt.f32 %v429_v26 }
 0x152   : > { %3129 = vst [vmem:[#allocation10_spill] sm:$0xff] %v2380_v13  ;;  %v402_v27 = vpop.xlane.xlu1 %401  ;;  %1794 = vmatmul.mubr.msk.f32.gmra.mrb[4].mxu0 %vm372_vm0, %v2380_v13 }
 0x153   : > { %v1995_v29 = vpop.eup %1994  ;;  %v430_v30 = vmax.f32 %v402_v27, 1e-24 }
 0x154   : > { %v2385_v16 = vmul.f32 %v1995_v29, %v2292_v22 }
 0x155   : > { %2000 = vrsqrt.f32 %v430_v30 }
 0x156   : > { %3130 = vst [vmem:[#allocation11_spill] sm:$0xff] %v2385_v16  ;;  %v405_v31 = vpop.xlane.xlu1 %404  ;;  %1796 = vmatprep.mubr.msk.f32.mxu0 %vm372_vm0, %v2385_v16 }
 0x157   : > { %v1997_v32 = vpop.eup %1996  ;;  %v431_v33 = vmax.f32 %v405_v31, 1e-24 }
 0x158   : > { %v2390_v19 = vmul.f32 %v1997_v32, %v2303_v28 }
 0x159   : > { %2002 = vrsqrt.f32 %v431_v33 }
 0x15a   : > { %3131 = vst [vmem:[#allocation12_spill] sm:$0xff] %v2390_v19  ;;  %v408_v35 = vpop.xlane.xlu1 %407  ;;  %1797 = vmatmul.mubr.msk.f32.gmra.mrb[6].mxu0 %vm372_vm0, %v2390_v19 }
 0x15b   : > { %v1999_v36 = vpop.eup %1998  ;;  %v432_v38 = vmax.f32 %v408_v35, 1e-24 }
 0x15c   : > { %v2395_v22 = vmul.f32 %v1999_v36, %v2314_v34 }
 0x15d   : > { %2004 = vrsqrt.f32 %v432_v38 }
 0x15e   : > { %3132 = vst [vmem:[#allocation13_spill] sm:$0xff] %v2395_v22  ;;  %v411_v39 = vpop.xlane.xlu1 %410  ;;  %1799 = vmatprep.mubr.msk.f32.mxu0 %vm372_vm0, %v2395_v22 }
 0x15f   : > { %v2001_v41 = vpop.eup %2000  ;;  %v433_v42 = vmax.f32 %v411_v39, 1e-24 }
 0x160   : > { %v2400_v28 = vmul.f32 %v2001_v41, %v2319_v37 }
 0x161   : > { %2006 = vrsqrt.f32 %v433_v42 }
 0x162   : > { %3133 = vst [vmem:[#allocation14_spill] sm:$0xff] %v2400_v28  ;;  %v414_v44 = vpop.xlane.xlu1 %413  ;;  %1800 = vmatmul.mubr.msk.f32.gmra.mrb[8].mxu0 %vm372_vm0, %v2400_v28 }
 0x163   : > { %v2003_v45 = vpop.eup %2002  ;;  %v434_v47 = vmax.f32 %v414_v44, 1e-24 }
 0x164   : > { %v2405_v34 = vmul.f32 %v2003_v45, %v2324_v40 }
 0x165   : > { %2008 = vrsqrt.f32 %v434_v47 }
 0x166   : > { %3134 = vst [vmem:[#allocation15_spill] sm:$0xff] %v2405_v34  ;;  %v417_v48 = vpop.xlane.xlu1 %416  ;;  %1802 = vmatprep.mubr.msk.f32.mxu0 %vm372_vm0, %v2405_v34 }
 0x167   : > { %v2005_v50 = vpop.eup %2004  ;;  %v435_v51 = vmax.f32 %v417_v48, 1e-24 }
 0x168   : > { %v2410_v37 = vmul.f32 %v2005_v50, %v2329_v43 }
 0x169   : > { %2010 = vrsqrt.f32 %v435_v51 }
 0x16a   : > { %3135 = vst [vmem:[#allocation16_spill] sm:$0xff] %v2410_v37  ;;  %v420_v53 = vpop.xlane.xlu1 %419  ;;  %1803 = vmatmul.mubr.msk.f32.gmra.mrb[10].mxu0 %vm372_vm0, %v2410_v37 }
 0x16b   : > { %v2007_v54 = vpop.eup %2006  ;;  %v436_v56 = vmax.f32 %v420_v53, 1e-24 }
 0x16c   : > { %v2415_v40 = vmul.f32 %v2007_v54, %v2334_v46 }
 0x16d   : > { %2012 = vrsqrt.f32 %v436_v56 }
 0x16e   : > { %3136 = vst [vmem:[#allocation17_spill] sm:$0xff] %v2415_v40  ;;  %1805 = vmatprep.mubr.msk.f32.mxu0 %vm372_vm0, %v2415_v40 }
 0x16f   : > { %v2009_v57 = vpop.eup %2008 }
 0x170   : > { %v2420_v58 = vmul.f32 %v2009_v57, %v2339_v49  ;;  %v1685_v49 = vld [vmem:[%s3090_s2] ss:$0 sm:$0xff] }
 0x172   : > { %3137 = vst [vmem:[#allocation18_spill] sm:$0xff] %v2420_v58  ;;  %1806 = vmatmul.mubr.msk.f32.gmra.mrb[12].mxu0 %vm372_vm0, %v2420_v58 }
 0x173   : > { %v2011_v43 = vpop.eup %2010 }
 0x174   : > { %v2425_v59 = vmul.f32 %v2011_v43, %v2344_v52 }
 0x176   : > { %3138 = vst [vmem:[#allocation19_spill] sm:$0xff] %v2425_v59  ;;  %1808 = vmatprep.mubr.msk.f32.mxu0 %vm372_vm0, %v2425_v59 }
 0x177   : > { %v2013_v46 = vpop.eup %2012 }
 0x178   : > { %v2430_v60 = vmul.f32 %v2013_v46, %v2349_v55 }
 0x17a   : > { %3139 = vst [vmem:[#allocation20_spill] sm:$0xff] %v2430_v60  ;;  %1809 = vmatmul.mubr.msk.f32.gmra.mrb[14].mxu0 %vm372_vm0, %v2430_v60 }
 0x215   : > { %v1789_v61 = vpop.f32.mrb[0].mxu0 }
 0x216   : > { %v667_v62 = vmul.f32 2.0, %v1789_v61  ;;  %v587_v63 = vpop.f32.mrb[1].mxu0 }
 0x217   : > { %v666_v52 = vmul.f32 2.0, %v587_v63 }
 0x218   : > { %v2437_v0 = vsub.f32 %v667_v62, %v1685_v49  ;;  %v865_v62 = vlaneseq }
 0x219   : > { %v2440_v1 = vsub.f32 %v666_v52, %v1685_v49 }
 0x21a   : > { %707 = vmax.xlane.f32.xlu1 %v2437_v0  ;;  %v2485_v63 = vand.u32 127, %v865_v62 }
 0x21c   : > { %3145 = vst [vmem:[#allocation26_spill] sm:$0xff] %v2485_v63 }
 0x21d   : > { %v1792_v2 = vpop.f32.mrb[2].mxu0 }
 0x21e   : > { %v669_v55 = vmul.f32 2.0, %v1792_v2  ;;  %v597_v5 = vpop.f32.mrb[3].mxu0  ;;  %705 = vmax.xlane.f32.xlu1 %v2440_v1 }
 0x21f   : > { %v668_v8 = vmul.f32 2.0, %v597_v5 }
 0x220   : > { %v2443_v6 = vsub.f32 %v669_v55, %v1685_v49 }
 0x221   : > { %v2446_v11 = vsub.f32 %v668_v8, %v1685_v49 }
 0x222   : > { %711 = vmax.xlane.f32.xlu1 %v2443_v6 }
 0x225   : > { %v1795_v12 = vpop.f32.mrb[4].mxu0 }
 0x226   : > { %709 = vmax.xlane.f32.xlu1 %v2446_v11  ;;  %v607_v14 = vpop.f32.mrb[5].mxu0  ;;  %v671_v54 = vmul.f32 2.0, %v1795_v12 }
 0x227   : > { %v670_v47 = vmul.f32 2.0, %v607_v14 }
 0x228   : > { %v2479_v46 = vsub.f32 %v671_v54, %v1685_v49 }
 0x229   : > { %v2473_v56 = vsub.f32 %v670_v47, %v1685_v49 }
 0x22d   : > { %v1798_v15 = vpop.f32.mrb[6].mxu0 }
 0x22e   : > { %v673_v17 = vmul.f32 2.0, %v1798_v15  ;;  %v617_v18 = vpop.f32.mrb[7].mxu0 }
 0x22f   : > { %v672_v21 = vmul.f32 2.0, %v617_v18 }
 0x230   : > { %v2449_v20 = vsub.f32 %v673_v17, %v1685_v49 }
 0x231   : > { %v2452_v23 = vsub.f32 %v672_v21, %v1685_v49 }
 0x232   : > { %719 = vmax.xlane.f32.xlu1 %v2449_v20 }
 0x235   : > { %v1801_v24 = vpop.f32.mrb[8].mxu0 }
 0x236   : > { %v675_v25 = vmul.f32 2.0, %v1801_v24  ;;  %717 = vmax.xlane.f32.xlu1 %v2452_v23  ;;  %v627_v26 = vpop.f32.mrb[9].mxu0 }
 0x237   : > { %v674_v29 = vmul.f32 2.0, %v627_v26 }
 0x238   : > { %v2455_v27 = vsub.f32 %v675_v25, %v1685_v49 }
 0x239   : > { %v2458_v30 = vsub.f32 %v674_v29, %v1685_v49 }
 0x23a   : > { %723 = vmax.xlane.f32.xlu1 %v2455_v27 }
 0x23d   : > { %v1804_v31 = vpop.f32.mrb[10].mxu0 }
 0x23e   : > { %v677_v32 = vmul.f32 2.0, %v1804_v31  ;;  %721 = vmax.xlane.f32.xlu1 %v2458_v30  ;;  %v637_v33 = vpop.f32.mrb[11].mxu0 }
 0x23f   : > { %v676_v36 = vmul.f32 2.0, %v637_v33 }
 0x240   : > { %v2461_v35 = vsub.f32 %v677_v32, %v1685_v49 }
 0x241   : > { %v2464_v38 = vsub.f32 %v676_v36, %v1685_v49 }
 0x242   : > { %3140 = vst [vmem:[#allocation21_spill] sm:$0xff] %v2461_v35  ;;  %727 = vmax.xlane.f32.xlu1 %v2461_v35 }
 0x245   : > { %v1807_v39 = vpop.f32.mrb[12].mxu0 }
 0x246   : > { %v679_v41 = vmul.f32 2.0, %v1807_v39  ;;  %725 = vmax.xlane.f32.xlu1 %v2464_v38  ;;  %v647_v42 = vpop.f32.mrb[13].mxu0 }
 0x247   : > { %v678_v45 = vmul.f32 2.0, %v647_v42 }
 0x248   : > { %v2467_v44 = vsub.f32 %v679_v41, %v1685_v49 }
 0x249   : > { %v2470_v48 = vsub.f32 %v678_v45, %v1685_v49 }
 0x24a   : > { %3141 = vst [vmem:[#allocation22_spill] sm:$0xff] %v2467_v44  ;;  %731 = vmax.xlane.f32.xlu1 %v2467_v44 }
 0x24b   : > { %3142 = vst [vmem:[#allocation23_spill] sm:$0xff] %v2470_v48 }
 0x24d   : > { %v1810_v50 = vpop.f32.mrb[14].mxu0 }
 0x24e   : > { %729 = vmax.xlane.f32.xlu1 %v2470_v48  ;;  %v657_v51 = vpop.f32.mrb[15].mxu0  ;;  %v681_v57 = vmul.f32 2.0, %v1810_v50 }
 0x24f   : > { %v680_v53 = vmul.f32 2.0, %v657_v51 }
 0x250   : > { %v2481_v61 = vsub.f32 %v681_v57, %v1685_v49 }
 0x251   : > { %v2475_v43 = vsub.f32 %v680_v53, %v1685_v49 }
 0x252   : > { %713 = vmax.xlane.f32.xlu1 %v2473_v56  ;;  %3144 = vst [vmem:[#allocation25_spill] sm:$0xff] %v2481_v61 }
 0x253   : > { %3143 = vst [vmem:[#allocation24_spill] sm:$0xff] %v2475_v43  ;;  %733 = vmax.xlane.f32.xlu0 %v2475_v43 }
 0x256   : > { %715 = vmax.xlane.f32.xlu1 %v2479_v46 }
 0x257   : > { %735 = vmax.xlane.f32.xlu0 %v2481_v61 }
 0x2a7   : > { %v2487_v52 = vpop.xlane.xlu1 %707 }
 0x2a8   : > { %vm868_vm1 = vcmp.eq.f32.partialorder %v2437_v0, %v2487_v52 }
 0x2a9   : > { %v2492_v2 = vsel %vm868_vm1, %v2485_v63, 128 }
 0x2aa   : > { %v914_v55 = vshra.s32 %v2492_v2, 16 }
 0x2ab   : > { %v2495_v5 = vpop.xlane.xlu1 %705 }
 0x2ac   : > { %vm867_vm2 = vcmp.eq.f32.partialorder %v2440_v1, %v2495_v5  ;;  %v2499_v49 = vcvt.s32.f32 %v914_v55 }
 0x2ad   : > { %v2502_v8 = vsel %vm867_vm2, %v2485_v63, 128 }
 0x2ae   : > { %917 = vmin.xlane.f32.xlu1 %v2499_v49  ;;  %v900_v12 = vshra.s32 %v2502_v8, 16 }
 0x2af   : > { %v2509_v15 = vpop.xlane.xlu1 %711 }
 0x2b0   : > { %v2506_v14 = vcvt.s32.f32 %v900_v12  ;;  %vm870_vm8 = vcmp.eq.f32.partialorder %v2443_v6, %v2509_v15 }
 0x2b1   : > { %v2569_v57 = vsel %vm870_vm8, %v2485_v63, 128 }
 0x2b2   : > { %903 = vmin.xlane.f32.xlu1 %v2506_v14 }
 0x2b3   : > { %v2511_v17 = vpop.xlane.xlu1 %709 }
 0x2b4   : > { %vm869_vm6 = vcmp.eq.f32.partialorder %v2446_v11, %v2511_v17 }
 0x2b5   : > { %v2552_v45 = vsel %vm869_vm6, %v2485_v63, 128 }
 0x2b6   : > { %v928_v54 = vshra.s32 %v2552_v45, 16 }
 0x2bf   : > { %v2513_v18 = vpop.xlane.xlu1 %719 }
 0x2c0   : > { %vm874_vm3 = vcmp.eq.f32.partialorder %v2449_v20, %v2513_v18 }
 0x2c1   : > { %v2518_v21 = vsel %vm874_vm3, %v2485_v63, 128 }
 0x2c2   : > { %v998_v24 = vshra.s32 %v2518_v21, 16 }
 0x2c3   : > { %v2521_v25 = vpop.xlane.xlu1 %717 }
 0x2c4   : > { %vm873_vm4 = vcmp.eq.f32.partialorder %v2452_v23, %v2521_v25  ;;  %v2525_v26 = vcvt.s32.f32 %v998_v24  ;;  %v2580_v24 = vcvt.s32.f32 %v928_v54 }
 0x2c5   : > { %v2528_v29 = vsel %vm873_vm4, %v2485_v63, 128 }
 0x2c6   : > { %1001 = vmin.xlane.f32.xlu0 %v2525_v26  ;;  %v984_v31 = vshra.s32 %v2528_v29, 16 }
 0x2c7   : > { %v2532_v32 = vpop.xlane.xlu1 %723 }
 0x2c8   : > { %vm876_vm5 = vcmp.eq.f32.partialorder %v2455_v27, %v2532_v32  ;;  %v2536_v33 = vcvt.s32.f32 %v984_v31 }
 0x2c9   : > { %v2539_v36 = vsel %vm876_vm5, %v2485_v63, 128 }
 0x2ca   : > { %987 = vmin.xlane.f32.xlu1 %v2536_v33  ;;  %v1026_v39 = vshra.s32 %v2539_v36, 16 }
 0x2cb   : > { %v2545_v41 = vpop.xlane.xlu1 %721 }
 0x2cc   : > { %vm875_vm7 = vcmp.eq.f32.partialorder %v2458_v30, %v2545_v41  ;;  %v2549_v42 = vcvt.s32.f32 %v1026_v39  ;;  %v942_v39 = vshra.s32 %v2569_v57, 16 }
 0x2cd   : > { %v2555_v47 = vsel %vm875_vm7, %v2485_v63, 128 }
 0x2ce   : > { %1029 = vmin.xlane.f32.xlu0 %v2549_v42  ;;  %v1012_v50 = vshra.s32 %v2555_v47, 16  ;;  %v2595_v54 = vcvt.s32.f32 %v942_v39 }
 0x2cf   : > { %v2561_v51 = vpop.xlane.xlu1 %727 }
 0x2d0   : > { %vm878_vm9 = vcmp.eq.f32.partialorder %v2461_v35, %v2561_v51  ;;  %v2565_v53 = vcvt.s32.f32 %v1012_v50 }
 0x2d1   : > { %v2572_v62 = vsel %vm878_vm9, %v2485_v63, 128 }
 0x2d2   : > { %1015 = vmin.xlane.f32.xlu1 %v2565_v53  ;;  %v1054_v55 = vshra.s32 %v2572_v62, 16 }
 0x2d3   : > { %v2576_v12 = vpop.xlane.xlu1 %725 }
 0x2d4   : > { %vm877_vm10 = vcmp.eq.f32.partialorder %v2464_v38, %v2576_v12  ;;  %v2582_v31 = vcvt.s32.f32 %v1054_v55 }
 0x2d5   : > { %v2586_v50 = vsel %vm877_vm10, %v2485_v63, 128 }
 0x2d6   : > { %931 = vmin.xlane.f32.xlu1 %v2580_v24  ;;  %1057 = vmin.xlane.f32.xlu0 %v2582_v31  ;;  %v1040_v60 = vshra.s32 %v2586_v50, 16 }
 0x2d7   : > { %v2591_v59 = vpop.xlane.xlu1 %731 }
 0x2d8   : > { %3146 = vst [vmem:[#allocation27_spill] sm:$0xff] %v2591_v59  ;;  %vm880_vm11 = vcmp.eq.f32.partialorder %v2467_v44, %v2591_v59  ;;  %v2597_v55 = vcvt.s32.f32 %v1040_v60 }
 0x2d9   : > { %v2600_v40 = vsel %vm880_vm11, %v2485_v63, 128 }
 0x2da   : > { %945 = vmin.xlane.f32.xlu1 %v2595_v54  ;;  %1043 = vmin.xlane.f32.xlu0 %v2597_v55  ;;  %v1082_v58 = vshra.s32 %v2600_v40, 16 }
 0x2db   : > { %v2605_v34 = vpop.xlane.xlu1 %729 }
 0x2dc   : > { %3147 = vst [vmem:[#allocation28_spill] sm:$0xff] %v2605_v34  ;;  %vm879_vm12 = vcmp.eq.f32.partialorder %v2470_v48, %v2605_v34  ;;  %v2609_v37 = vcvt.s32.f32 %v1082_v58  ;;  %v1175_v48 = vld [vmem:[%s3091_s3 + $0x20] sm:$0xff]  ;;  %v1176_v34 = vld [vmem:[%s3091_s3 + $0x28] sm:$0xff] }
 0x2dd   : > { %v2612_v39 = vsel %vm879_vm12, %v2485_v63, 128  ;;  %v1883_v35 = vpack.c.bf16 %v1176_v34, %v1175_v48  ;;  %v1180_v34 = vld [vmem:[%s3091_s3 + $0x48] sm:$0xff] }
 0x2de   : > { %1085 = vmin.xlane.f32.xlu0 %v2609_v37  ;;  %v1068_v60 = vshra.s32 %v2612_v39, 16 }
 0x2df   : > { %v2616_v22 = vpop.xlane.xlu1 %713 }
 0x2e0   : > { %vm871_vm13 = vcmp.eq.f32.partialorder %v2473_v56, %v2616_v22  ;;  %v2620_v28 = vpop.xlane.xlu0 %733  ;;  %v2622_v16 = vcvt.s32.f32 %v1068_v60 }
 0x2e1   : > { %3148 = vst [vmem:[#allocation29_spill] sm:$0xff] %v2620_v28  ;;  %v2625_v19 = vsel %vm871_vm13, %v2485_v63, 128  ;;  %vm881_vm14 = vcmp.eq.f32.partialorder %v2475_v43, %v2620_v28 }
 0x2e2   : > { %v2630_v58 = vsel %vm881_vm14, %v2485_v63, 128  ;;  %1071 = vmin.xlane.f32.xlu0 %v2622_v16  ;;  %v956_v10 = vshra.s32 %v2625_v19, 16 }
 0x2e3   : > { %v2634_v13 = vpop.xlane.xlu1 %715  ;;  %v1096_v4 = vshra.s32 %v2630_v58, 16 }
 0x2e4   : > { %vm872_vm15 = vcmp.eq.f32.partialorder %v2479_v46, %v2634_v13  ;;  %v2639_v60 = vpop.xlane.xlu0 %735  ;;  %v2641_v7 = vcvt.s32.f32 %v956_v10 }
 0x2e5   : > { %3149 = vst [vmem:[#allocation30_spill] sm:$0xff] %v2639_v60  ;;  %v2644_v3 = vsel %vm872_vm15, %v2485_v63, 128  ;;  %vm882_vm1 = vcmp.eq.f32.partialorder %v2481_v61, %v2639_v60  ;;  %v2652_v43 = vcvt.s32.f32 %v1096_v4  ;;  %v1172_v4 = vld [vmem:[%s3091_s3 + $0x8] sm:$0xff]  ;;  %v1173_v61 = vld [vmem:[%s3091_s3 + $0x10] sm:$0xff] }
 0x2e6   : > { %v2649_v9 = vsel %vm882_vm1, %v2485_v63, 128  ;;  %959 = vmin.xlane.f32.xlu1 %v2641_v7  ;;  %v970_v28 = vshra.s32 %v2644_v3, 16  ;;  %v1171_v63 = vld [vmem:[%s3091_s3] sm:$0xff] }
 0x2e7   : > { %v1110_v44 = vshra.s32 %v2649_v9, 16  ;;  %1099 = vmin.xlane.f32.xlu0 %v2652_v43 }
 0x2e8   : > { %v2657_v10 = vcvt.s32.f32 %v970_v28  ;;  %v1875_v28 = vpack.c.bf16 %v1172_v4, %v1171_v63  ;;  %v1177_v63 = vld [vmem:[%s3091_s3 + $0x30] sm:$0xff] }
 0x2e9   : > { %v2659_v59 = vcvt.s32.f32 %v1110_v44  ;;  %v1174_v44 = vld [vmem:[%s3091_s3 + $0x18] sm:$0xff] }
 0x2ea   : > { %973 = vmin.xlane.f32.xlu1 %v2657_v10  ;;  %v1879_v60 = vpack.c.bf16 %v1174_v44, %v1173_v61  ;;  %1876 = vmatprep.subr.bf16.mxu0 %v1875_v28  ;;  %v1178_v61 = vld [vmem:[%s3091_s3 + $0x38] sm:$0xff] }
 0x2eb   : > { %1113 = vmin.xlane.f32.xlu0 %v2659_v59  ;;  %1907 = vmatprep.subr.bf16.mxu1 %v1875_v28  ;;  %v1887_v4 = vpack.c.bf16 %v1178_v61, %v1177_v63  ;;  %v1182_v44 = vld [vmem:[%s3091_s3 + $0x58] sm:$0xff] }
 0x2ec   : > { %1878 = vmatpush3.bf16.msra.mxu0 %v1875_v28  ;;  %1915 = vmatpush3.bf16.msra.mxu1 %v1875_v28  ;;  %v1179_v28 = vld [vmem:[%s3091_s3 + $0x40] sm:$0xff] }
 0x2ed   : > { %1880 = vmatprep.subr.bf16.mxu0 %v1879_v60  ;;  %1908 = vmatprep.subr.bf16.mxu1 %v1879_v60  ;;  %v1891_v48 = vpack.c.bf16 %v1180_v34, %v1179_v28  ;;  %v899_v34 = vand.u32 65535, %v2502_v8  ;;  %v1184_v8 = vld [vmem:[%s3091_s3 + $0x68] sm:$0xff] }
 0x2f0   : > { %1882 = vmatpush3.bf16.msra.mxu0 %v1879_v60  ;;  %1916 = vmatpush3.bf16.msra.mxu1 %v1879_v60  ;;  %v1181_v60 = vld [vmem:[%s3091_s3 + $0x50] sm:$0xff] }
 0x2f1   : > { %1884 = vmatprep.subr.bf16.mxu0 %v1883_v35  ;;  %1909 = vmatprep.subr.bf16.mxu1 %v1883_v35  ;;  %v1895_v63 = vpack.c.bf16 %v1182_v44, %v1181_v60  ;;  %v901_v44 = vcvt.s32.f32 %v899_v34 }
 0x2f4   : > { %1886 = vmatpush3.bf16.msra.mxu0 %v1883_v35  ;;  %1917 = vmatpush3.bf16.msra.mxu1 %v1883_v35  ;;  %v913_v35 = vand.u32 65535, %v2492_v2  ;;  %v1183_v2 = vld [vmem:[%s3091_s3 + $0x60] sm:$0xff] }
 0x2f5   : > { %1888 = vmatprep.subr.bf16.mxu0 %v1887_v4  ;;  %1910 = vmatprep.subr.bf16.mxu1 %v1887_v4 }
 0x2f6   : > { %v915_v28 = vcvt.s32.f32 %v913_v35  ;;  %v1186_v35 = vld [vmem:[%s3091_s3 + $0x78] sm:$0xff] }
 0x2f8   : > { %1890 = vmatpush3.bf16.msra.mxu0 %v1887_v4  ;;  %1918 = vmatpush3.bf16.msra.mxu1 %v1887_v4 }
 0x2f9   : > { %1892 = vmatprep.subr.bf16.mxu0 %v1891_v48  ;;  %1911 = vmatprep.subr.bf16.mxu1 %v1891_v48 }
 0x2fc   : > { %1894 = vmatpush3.bf16.msra.mxu0 %v1891_v48  ;;  %1919 = vmatpush3.bf16.msra.mxu1 %v1891_v48 }
 0x2fd   : > { %1896 = vmatprep.subr.bf16.mxu0 %v1895_v63  ;;  %1912 = vmatprep.subr.bf16.mxu1 %v1895_v63 }
 0x300   : > { %1898 = vmatpush3.bf16.msra.mxu0 %v1895_v63  ;;  %1920 = vmatpush3.bf16.msra.mxu1 %v1895_v63  ;;  %v1899_v63 = vpack.c.bf16 %v1184_v8, %v1183_v2  ;;  %v1025_v8 = vand.u32 65535, %v2539_v36  ;;  %v927_v36 = vand.u32 65535, %v2552_v45 }
 0x302   : > { %1900 = vmatprep.subr.bf16.mxu0 %v1899_v63  ;;  %1913 = vmatprep.subr.bf16.mxu1 %v1899_v63 }
 0x304   : > { %1902 = vmatpush3.bf16.msra.mxu0 %v1899_v63  ;;  %1921 = vmatpush3.bf16.msra.mxu1 %v1899_v63  ;;  %v1027_v63 = vcvt.s32.f32 %v1025_v8  ;;  %v1039_v8 = vand.u32 65535, %v2586_v50  ;;  %v737_v50 = vsub.f32 %v2440_v1, %v2495_v5  ;;  %v955_v5 = vand.u32 65535, %v2625_v19 }
 0x305   : > { %v969_v19 = vand.u32 65535, %v2644_v3  ;;  %v743_v3 = vsub.f32 %v2452_v23, %v2521_v25  ;;  %v745_v25 = vsub.f32 %v2458_v30, %v2545_v41 }
 0x307   : > { %v765_v23 = vmul.f32 1.442695, %v743_v3 }
 0x33b   : > { %v2700_v61 = vpop.xlane.xlu1 %917 }
 0x33c   : > { %vm919_vm2 = vcmp.eq.f32.partialorder %v2499_v49, %v2700_v61  ;;  %v997_v49 = vand.u32 65535, %v2518_v21 }
 0x33d   : > { %v920_v4 = vsel %vm919_vm2, %v915_v28, inf }
 0x33e   : > { %921 = vmin.xlane.f32.xlu1 %v920_v4  ;;  %v999_v34 = vcvt.s32.f32 %v997_v49  ;;  %v983_v4 = vand.u32 65535, %v2528_v29 }
 0x33f   : > { %v2705_v60 = vpop.xlane.xlu1 %903 }
 0x340   : > { %vm905_vm3 = vcmp.eq.f32.partialorder %v2506_v14, %v2705_v60  ;;  %v1185_v14 = vld [vmem:[%s3091_s3 + $0x70] sm:$0xff]  ;;  %v985_v2 = vcvt.s32.f32 %v983_v4  ;;  %v1053_v4 = vand.u32 65535, %v2572_v62 }
 0x341   : > { %v906_v48 = vsel %vm905_vm3, %v901_v44, inf  ;;  %v1903_v44 = vpack.c.bf16 %v1186_v35, %v1185_v14 }
 0x342   : > { %907 = vmin.xlane.f32.xlu1 %v906_v48 }
 0x343   : > { %1904 = vmatprep.subr.bf16.mxu0 %v1903_v44  ;;  %1914 = vmatprep.subr.bf16.mxu1 %v1903_v44 }
 0x344   : > { %1906 = vmatpush3.bf16.msra.mxu0 %v1903_v44  ;;  %1922 = vmatpush3.bf16.msra.mxu1 %v1903_v44 }
 0x353   : > { %v2722_v28 = vpop.xlane.xlu0 %1001 }
 0x354   : > { %vm1003_vm4 = vcmp.eq.f32.partialorder %v2525_v26, %v2722_v28  ;;  %v1011_v26 = vand.u32 65535, %v2555_v47 }
 0x355   : > { %v1004_v21 = vsel %vm1003_vm4, %v999_v34, inf }
 0x356   : > { %1005 = vmin.xlane.f32.xlu0 %v1004_v21  ;;  %v1013_v34 = vcvt.s32.f32 %v1011_v26  ;;  %v929_v21 = vcvt.s32.f32 %v927_v36  ;;  %v1041_v26 = vcvt.s32.f32 %v1039_v8  ;;  %v1067_v36 = vand.u32 65535, %v2612_v39 }
 0x357   : > { %v2727_v48 = vpop.xlane.xlu1 %987  ;;  %v740_v39 = vsub.f32 %v2443_v6, %v2509_v15  ;;  %v1109_v8 = vand.u32 65535, %v2649_v9  ;;  %v744_v9 = vsub.f32 %v2449_v20, %v2513_v18  ;;  %v746_v20 = vsub.f32 %v2455_v27, %v2532_v32 }
 0x358   : > { %vm989_vm5 = vcmp.eq.f32.partialorder %v2536_v33, %v2727_v48  ;;  %v1069_v1 = vcvt.s32.f32 %v1067_v36 }
 0x359   : > { %v990_v49 = vsel %vm989_vm5, %v985_v2, inf  ;;  %v941_v2 = vand.u32 65535, %v2569_v57  ;;  %v1081_v57 = vand.u32 65535, %v2600_v40  ;;  %v738_v40 = vsub.f32 %v2437_v0, %v2487_v52 }
 0x35a   : > { %991 = vmin.xlane.f32.xlu1 %v990_v49  ;;  %v771_v41 = vmul.f32 1.442695, %v746_v20 }
 0x35b   : > { %v2732_v29 = vpop.xlane.xlu0 %1029 }
 0x35c   : > { %vm1031_vm6 = vcmp.eq.f32.partialorder %v2549_v42, %v2732_v29  ;;  %v1055_v42 = vcvt.s32.f32 %v1053_v4  ;;  %v753_v4 = vmul.f32 1.442695, %v737_v50  ;;  %v3151_v50 = vld [vmem:[#allocation28_spill] sm:$0xff] }
 0x35d   : > { %v1032_v14 = vsel %vm1031_vm6, %v1027_v63, inf  ;;  %v943_v63 = vcvt.s32.f32 %v941_v2  ;;  %v759_v2 = vmul.f32 1.442695, %v740_v39 }
 0x35e   : > { %1033 = vmin.xlane.f32.xlu0 %v1032_v14  ;;  %2014 = vpow2.f32 %v753_v4 }
 0x35f   : > { %v2737_v35 = vpop.xlane.xlu1 %1015 }
 0x360   : > { %vm1017_vm7 = vcmp.eq.f32.partialorder %v2565_v53, %v2737_v35 }
 0x361   : > { %v1018_v33 = vsel %vm1017_vm7, %v1013_v34, inf  ;;  %v1083_v34 = vcvt.s32.f32 %v1081_v57  ;;  %v747_v57 = vsub.f32 %v2464_v38, %v2576_v12 }
 0x362   : > { %1019 = vmin.xlane.f32.xlu1 %v1018_v33 }
 0x363   : > { %v2743_v44 = vpop.xlane.xlu1 %931  ;;  %v2745_v47 = vpop.xlane.xlu0 %1057  ;;  %v773_v32 = vmul.f32 1.442695, %v747_v57  ;;  %v3159_v57 = vld [vmem:[#allocation26_spill] sm:$0xff] }
 0x364   : > { %vm933_vm8 = vcmp.eq.f32.partialorder %v2580_v24, %v2743_v44  ;;  %vm1059_vm9 = vcmp.eq.f32.partialorder %v2582_v31, %v2745_v47 }
 0x365   : > { %v934_v45 = vsel %vm933_vm8, %v929_v21, inf  ;;  %v1060_v53 = vsel %vm1059_vm9, %v1055_v42, inf  ;;  %v755_v21 = vmul.f32 1.442695, %v738_v40  ;;  %v957_v42 = vcvt.s32.f32 %v955_v5  ;;  %v3153_v40 = vld [vmem:[#allocation27_spill] sm:$0xff]  ;;  %v3156_v5 = vld [vmem:[#allocation24_spill] sm:$0xff] }
 0x366   : > { %935 = vmin.xlane.f32.xlu1 %v934_v45  ;;  %1061 = vmin.xlane.f32.xlu0 %v1060_v53  ;;  %v971_v45 = vcvt.s32.f32 %v969_v19  ;;  %v1111_v53 = vcvt.s32.f32 %v1109_v8 }
 0x367   : > { %v2753_v62 = vpop.xlane.xlu1 %945  ;;  %v2755_v49 = vpop.xlane.xlu0 %1043  ;;  %2016 = vpow2.f32 %v755_v21 }
 0x368   : > { %vm947_vm10 = vcmp.eq.f32.partialorder %v2595_v54, %v2753_v62  ;;  %vm1045_vm11 = vcmp.eq.f32.partialorder %v2597_v55, %v2755_v49  ;;  %v739_v55 = vsub.f32 %v2446_v11, %v2511_v17  ;;  %v741_v11 = vsub.f32 %v2473_v56, %v2616_v22 }
 0x369   : > { %v948_v24 = vsel %vm947_vm10, %v943_v63, inf  ;;  %v1046_v31 = vsel %vm1045_vm11, %v1041_v26, inf  ;;  %v767_v26 = vmul.f32 1.442695, %v744_v9  ;;  %v924_v9 = vcvt.f32.s32 %v2700_v61 }
 0x36a   : > { %949 = vmin.xlane.f32.xlu1 %v948_v24  ;;  %1047 = vmin.xlane.f32.xlu0 %v1046_v31  ;;  %v757_v52 = vmul.f32 1.442695, %v739_v55  ;;  %v761_v22 = vmul.f32 1.442695, %v741_v11  ;;  %v3150_v24 = vld [vmem:[#allocation21_spill] sm:$0xff]  ;;  %v1008_v61 = vcvt.f32.s32 %v2722_v28 }
 0x36b   : > { %v2764_v14 = vpop.xlane.xlu0 %1085  ;;  %v748_v31 = vsub.f32 %v3150_v24, %v2561_v51 }
 0x36c   : > { %vm1087_vm12 = vcmp.eq.f32.partialorder %v2609_v37, %v2764_v14  ;;  %v1095_v37 = vand.u32 65535, %v2630_v58  ;;  %2018 = vpow2.f32 %v757_v52  ;;  %v3158_v52 = vld [vmem:[#allocation25_spill] sm:$0xff] }
 0x36d   : > { %v1088_v54 = vsel %vm1087_vm12, %v1083_v34, inf  ;;  %2020 = vpow2.f32 %v759_v2  ;;  %v3152_v34 = vld [vmem:[#allocation23_spill] sm:$0xff]  ;;  %v775_v12 = vmul.f32 1.442695, %v748_v31 }
 0x36e   : > { %1089 = vmin.xlane.f32.xlu0 %v1088_v54  ;;  %v1097_v58 = vcvt.s32.f32 %v1095_v37  ;;  %2022 = vpow2.f32 %v761_v22  ;;  %v749_v36 = vsub.f32 %v3152_v34, %v3151_v50  ;;  %v3154_v54 = vld [vmem:[#allocation22_spill] sm:$0xff] }
 0x36f   : > { %v2773_v33 = vpop.xlane.xlu0 %1071  ;;  %v750_v55 = vsub.f32 %v3154_v54, %v3153_v40  ;;  %v3157_v37 = vld [vmem:[#allocation30_spill] sm:$0xff]  ;;  %v1036_v54 = vcvt.f32.s32 %v2732_v29 }
 0x370   : > { %vm1073_vm13 = vcmp.eq.f32.partialorder %v2622_v16, %v2773_v33  ;;  %v742_v16 = vsub.f32 %v2479_v46, %v2634_v13  ;;  %v777_v4 = vmul.f32 1.442695, %v749_v36  ;;  %v752_v11 = vsub.f32 %v3158_v52, %v3157_v37 }
 0x371   : > { %v1074_v0 = vsel %vm1073_vm13, %v1069_v1, inf  ;;  %v3155_v1 = vld [vmem:[#allocation29_spill] sm:$0xff]  ;;  %v1037_v28 = vshll.u32 %v1036_v54, 16  ;;  %v1064_v52 = vcvt.f32.s32 %v2745_v47 }
 0x372   : > { %1075 = vmin.xlane.f32.xlu0 %v1074_v0  ;;  %v763_v13 = vmul.f32 1.442695, %v742_v16  ;;  %v751_v21 = vsub.f32 %v3156_v5, %v3155_v1  ;;  %v779_v0 = vmul.f32 1.442695, %v750_v55  ;;  %v783_v16 = vmul.f32 1.442695, %v752_v11 }
 0x373   : > { %v2783_v17 = vpop.xlane.xlu1 %959 }
 0x374   : > { %vm961_vm14 = vcmp.eq.f32.partialorder %v2641_v7, %v2783_v17  ;;  %v2790_v6 = vpop.xlane.xlu0 %1099  ;;  %2024 = vpow2.f32 %v763_v13  ;;  %v781_v19 = vmul.f32 1.442695, %v751_v21  ;;  %v938_v21 = vcvt.f32.s32 %v2743_v44 }
 0x375   : > { %v962_v15 = vsel %vm961_vm14, %v957_v42, inf  ;;  %vm1101_vm15 = vcmp.eq.f32.partialorder %v2652_v43, %v2790_v6  ;;  %2026 = vpow2.f32 %v765_v23  ;;  %v925_v23 = vshll.u32 %v924_v9, 16 }
 0x376   : > { %963 = vmin.xlane.f32.xlu1 %v962_v15  ;;  %v1102_v7 = vsel %vm1101_vm15, %v1097_v58, inf  ;;  %2028 = vpow2.f32 %v767_v26  ;;  %v1050_v9 = vcvt.f32.s32 %v2755_v49 }
 0x377   : > { %v2797_v56 = vpop.xlane.xlu1 %973  ;;  %1103 = vmin.xlane.f32.xlu0 %v1102_v7 }
 0x378   : > { %vm975_vm1 = vcmp.eq.f32.partialorder %v2657_v10, %v2797_v56  ;;  %v2803_v46 = vpop.xlane.xlu0 %1113  ;;  %v2809_v10 = vpop.eup %2014 }
 0x379   : > { %v976_v43 = vsel %vm975_vm1, %v971_v45, inf  ;;  %vm1115_vm2 = vcmp.eq.f32.partialorder %v2659_v59, %v2803_v46  ;;  %v2813_v18 = vpop.eup %2016  ;;  %v769_v59 = vmul.f32 1.442695, %v745_v25 }
 0x37a   : > { %977 = vmin.xlane.f32.xlu1 %v976_v43  ;;  %v1116_v63 = vsel %vm1115_vm2, %v1111_v53, inf  ;;  %v2818_v30 = vpop.eup %2018  ;;  %v910_v43 = vcvt.f32.s32 %v2705_v60  ;;  %v994_v60 = vcvt.f32.s32 %v2727_v48 }
 0x37b   : > { %1117 = vmin.xlane.f32.xlu0 %v1116_v63  ;;  %v2823_v27 = vpop.eup %2020  ;;  %2030 = vpow2.f32 %v769_v59 }
 0x37c   : > { %v2829_v38 = vpop.eup %2022  ;;  %2032 = vpow2.f32 %v771_v41  ;;  %v911_v63 = vshll.u32 %v910_v43, 16  ;;  %v2158_v41 = vmov 1.0   ;;  %v995_v34 = vshll.u32 %v994_v60, 16 }
 0x37d   : > { %2034 = vpow2.f32 %v773_v32  ;;  %v1009_v32 = vshll.u32 %v1008_v61, 16  ;;  %v1092_v61 = vcvt.f32.s32 %v2764_v14  ;;  %v1078_v60 = vcvt.f32.s32 %v2773_v33 }
 0x37e   : > { %785 = vadd.xlane.f32.xlu1 %v2809_v10  ;;  %v2834_v51 = vpop.eup %2024  ;;  %2036 = vpow2.f32 %v775_v12  ;;  %v966_v14 = vcvt.f32.s32 %v2783_v17  ;;  %v1120_v17 = vcvt.f32.s32 %v2803_v46 }
 0x37f   : > { %787 = vadd.xlane.f32.xlu0 %v2813_v18  ;;  %v2839_v39 = vpop.eup %2026  ;;  %2038 = vpow2.f32 %v777_v4  ;;  %v1022_v4 = vcvt.f32.s32 %v2737_v35  ;;  %v952_v35 = vcvt.f32.s32 %v2753_v62 }
 0x380   : > { %v2844_v42 = vpop.eup %2028  ;;  %2040 = vpow2.f32 %v779_v0 }
 0x381   : > { %2042 = vpow2.f32 %v781_v19  ;;  %v1023_v5 = vshll.u32 %v1022_v4, 16  ;;  %v953_v47 = vshll.u32 %v952_v35, 16  ;;  %v980_v4 = vcvt.f32.s32 %v2797_v56 }
 0x382   : > { %789 = vadd.xlane.f32.xlu1 %v2818_v30  ;;  %2044 = vpow2.f32 %v783_v16  ;;  %v939_v16 = vshll.u32 %v938_v21, 16 }
 0x383   : > { %791 = vadd.xlane.f32.xlu0 %v2823_v27 }
 0x385   : > { %v2847_v2 = vpop.eup %2030 }
 0x386   : > { %793 = vadd.xlane.f32.xlu1 %v2829_v38  ;;  %v2850_v15 = vpop.eup %2032 }
 0x387   : > { %795 = vadd.xlane.f32.xlu0 %v2834_v51  ;;  %v2853_v58 = vpop.eup %2034 }
 0x388   : > { %v2856_v8 = vpop.eup %2036 }
 0x389   : > { %v2859_v3 = vpop.eup %2038 }
 0x38a   : > { %797 = vadd.xlane.f32.xlu1 %v2839_v39  ;;  %v2862_v22 = vpop.eup %2040 }
 0x38b   : > { %799 = vadd.xlane.f32.xlu0 %v2844_v42  ;;  %v2865_v7 = vpop.eup %2042 }
 0x38c   : > { %v2868_v45 = vpop.eup %2044 }
 0x38e   : > { %801 = vadd.xlane.f32.xlu1 %v2847_v2 }
 0x38f   : > { %803 = vadd.xlane.f32.xlu0 %v2850_v15 }
 0x392   : > { %805 = vadd.xlane.f32.xlu1 %v2853_v58 }
 0x393   : > { %807 = vadd.xlane.f32.xlu0 %v2856_v8 }
 0x396   : > { %809 = vadd.xlane.f32.xlu1 %v2859_v3 }
 0x397   : > { %811 = vadd.xlane.f32.xlu0 %v2862_v22 }
 0x39a   : > { %813 = vadd.xlane.f32.xlu1 %v2865_v7 }
 0x39b   : > { %815 = vadd.xlane.f32.xlu0 %v2868_v45 }
 0x3cb   : > { %v922_v13 = vpop.xlane.xlu1 %921 }
 0x3cc   : > { %v923_v53 = vcvt.f32.s32 %v922_v13 }
 0x3ce   : > { %v926_v20 = vadd.s32 %v925_v23, %v923_v53  ;;  %v1065_v53 = vshll.u32 %v1064_v52, 16  ;;  %v1121_v52 = vshll.u32 %v1120_v17, 16 }
 0x3cf   : > { %v908_v25 = vpop.xlane.xlu1 %907 }
 0x3d0   : > { %v909_v26 = vcvt.f32.s32 %v908_v25  ;;  %vm1124_vm4 = vcmp.eq.s32.totalorder %v3159_v57, %v926_v20  ;;  %v1051_v25 = vshll.u32 %v1050_v9, 16 }
 0x3d2   : > { %v912_v59 = vadd.s32 %v911_v63, %v909_v26 }
 0x3d4   : > { %vm1123_vm3 = vcmp.eq.s32.totalorder %v3159_v57, %v912_v59 }
 0x3d5   : > { %1843 = vmatprep.mubr.msk.f32.mxu0 %vm1123_vm3, %v2158_v41 }
 0x3d6   : > { %1844 = vmatmul.mubr.msk.f32.vlgmr.msra.gmra.mrb[16].mxu0 %vm1124_vm4, %v2158_v41 }
 0x3e3   : > { %v1006_v24 = vpop.xlane.xlu0 %1005 }
 0x3e4   : > { %v1007_v31 = vcvt.f32.s32 %v1006_v24 }
 0x3e6   : > { %v1010_v12 = vadd.s32 %v1009_v32, %v1007_v31  ;;  %v1093_v32 = vshll.u32 %v1092_v61, 16 }
 0x3e7   : > { %v992_v50 = vpop.xlane.xlu1 %991 }
 0x3e8   : > { %v993_v36 = vcvt.f32.s32 %v992_v50  ;;  %vm1130_vm6 = vcmp.eq.s32.totalorder %v3159_v57, %v1010_v12  ;;  %v1106_v12 = vcvt.f32.s32 %v2790_v6 }
 0x3ea   : > { %v996_v40 = vadd.s32 %v995_v34, %v993_v36  ;;  %v1079_v34 = vshll.u32 %v1078_v60, 16 }
 0x3eb   : > { %v1034_v55 = vpop.xlane.xlu0 %1033 }
 0x3ec   : > { %vm1129_vm5 = vcmp.eq.s32.totalorder %v3159_v57, %v996_v40  ;;  %v1035_v1 = vcvt.f32.s32 %v1034_v55  ;;  %v967_v55 = vshll.u32 %v966_v14, 16 }
 0x3ed   : > { %1852 = vmatprep.mubr.msk.f32.mxu1 %vm1129_vm5, %v2158_v41 }
 0x3ee   : > { %1853 = vmatmul.mubr.msk.f32.vlgmr.msra.gmra.mrb[0].mxu1 %vm1130_vm6, %v2158_v41  ;;  %v1038_v37 = vadd.s32 %v1037_v28, %v1035_v1 }
 0x3ef   : > { %v1020_v48 = vpop.xlane.xlu1 %1019 }
 0x3f0   : > { %v1021_v0 = vcvt.f32.s32 %v1020_v48  ;;  %vm1132_vm8 = vcmp.eq.s32.totalorder %v3159_v57, %v1038_v37  ;;  %v1107_v48 = vshll.u32 %v1106_v12, 16 }
 0x3f2   : > { %v1024_v29 = vadd.s32 %v1023_v5, %v1021_v0  ;;  %v981_v0 = vshll.u32 %v980_v4, 16 }
 0x3f3   : > { %v936_v11 = vpop.xlane.xlu1 %935  ;;  %v1062_v19 = vpop.xlane.xlu0 %1061 }
 0x3f4   : > { %v937_v13 = vcvt.f32.s32 %v936_v11  ;;  %vm1131_vm7 = vcmp.eq.s32.totalorder %v3159_v57, %v1024_v29  ;;  %v1063_v43 = vcvt.f32.s32 %v1062_v19 }
 0x3f5   : > { %1855 = vmatprep.mubr.msk.f32.mxu1 %vm1131_vm7, %v2158_v41 }
 0x3f6   : > { %v940_v44 = vadd.s32 %v939_v16, %v937_v13  ;;  %1856 = vmatmul.mubr.msk.f32.gmra.mrb[2].mxu1 %vm1132_vm8, %v2158_v41  ;;  %v1066_v49 = vadd.s32 %v1065_v53, %v1063_v43 }
 0x3f7   : > { %v950_v23 = vpop.xlane.xlu1 %949  ;;  %v1048_v62 = vpop.xlane.xlu0 %1047 }
 0x3f8   : > { %v951_v63 = vcvt.f32.s32 %v950_v23  ;;  %v1049_v26 = vcvt.f32.s32 %v1048_v62  ;;  %vm1125_vm9 = vcmp.eq.s32.totalorder %v3159_v57, %v940_v44  ;;  %vm1134_vm12 = vcmp.eq.s32.totalorder %v3159_v57, %v1066_v49 }
 0x3f9   : > { %1846 = vmatprep.mubr.msk.f32.mxu0 %vm1125_vm9, %v2158_v41 }
 0x3fa   : > { %v954_v20 = vadd.s32 %v953_v47, %v951_v63  ;;  %v1052_v59 = vadd.s32 %v1051_v25, %v1049_v26 }
 0x3fb   : > { %v1090_v24 = vpop.xlane.xlu0 %1089 }
 0x3fc   : > { %vm1126_vm10 = vcmp.eq.s32.totalorder %v3159_v57, %v954_v20  ;;  %vm1133_vm11 = vcmp.eq.s32.totalorder %v3159_v57, %v1052_v59  ;;  %v1091_v31 = vcvt.f32.s32 %v1090_v24 }
 0x3fd   : > { %1847 = vmatmul.mubr.msk.f32.gmra.mrb[18].mxu0 %vm1126_vm10, %v2158_v41  ;;  %1858 = vmatprep.mubr.msk.f32.mxu1 %vm1133_vm11, %v2158_v41 }
 0x3fe   : > { %1859 = vmatmul.mubr.msk.f32.gmra.mrb[4].mxu1 %vm1134_vm12, %v2158_v41  ;;  %v1094_v33 = vadd.s32 %v1093_v32, %v1091_v31 }
 0x3ff   : > { %v1076_v50 = vpop.xlane.xlu0 %1075 }
 0x400   : > { %v1077_v36 = vcvt.f32.s32 %v1076_v50  ;;  %vm1136_vm14 = vcmp.eq.s32.totalorder %v3159_v57, %v1094_v33 }
 0x402   : > { %v1080_v40 = vadd.s32 %v1079_v34, %v1077_v36 }
 0x403   : > { %v964_v54 = vpop.xlane.xlu1 %963 }
 0x404   : > { %v965_v1 = vcvt.f32.s32 %v964_v54  ;;  %vm1135_vm13 = vcmp.eq.s32.totalorder %v3159_v57, %v1080_v40  ;;  %v1104_v28 = vpop.xlane.xlu0 %1103 }
 0x405   : > { %1861 = vmatprep.mubr.msk.f32.mxu1 %vm1135_vm13, %v2158_v41  ;;  %v1105_v21 = vcvt.f32.s32 %v1104_v28 }
 0x406   : > { %v968_v5 = vadd.s32 %v967_v55, %v965_v1  ;;  %1862 = vmatmul.mubr.msk.f32.gmra.mrb[6].mxu1 %vm1136_vm14, %v2158_v41 }
 0x407   : > { %v978_v6 = vpop.xlane.xlu1 %977  ;;  %v1108_v37 = vadd.s32 %v1107_v48, %v1105_v21  ;;  %v3160_v21 = vld [vmem:[#allocation6_spill] sm:$0xff] }
 0x408   : > { %v979_v29 = vcvt.f32.s32 %v978_v6  ;;  %vm1127_vm15 = vcmp.eq.s32.totalorder %v3159_v57, %v968_v5  ;;  %v1118_v56 = vpop.xlane.xlu0 %1117 }
 0x409   : > { %1849 = vmatprep.mubr.msk.f32.mxu0 %vm1127_vm15, %v2158_v41  ;;  %v1119_v11 = vcvt.f32.s32 %v1118_v56  ;;  %vm1137_vm1 = vcmp.eq.s32.totalorder %v3159_v57, %v1108_v37 }
 0x40a   : > { %v982_v35 = vadd.s32 %v981_v0, %v979_v29  ;;  %1864 = vmatprep.mubr.msk.f32.mxu1 %vm1137_vm1, %v2158_v41  ;;  %v3161_v0 = vld [vmem:[#allocation5_spill] sm:$0xff] }
 0x40b   : > { %v786_v46 = vpop.xlane.xlu1 %785  ;;  %v1122_v19 = vadd.s32 %v1121_v52, %v1119_v11 }
 0x40c   : > { %2046 = vrcp.f32 %v786_v46  ;;  %vm1128_vm2 = vcmp.eq.s32.totalorder %v3159_v57, %v982_v35  ;;  %v788_v16 = vpop.xlane.xlu0 %787  ;;  %v3162_v46 = vld [vmem:[#allocation8_spill] sm:$0xff] }
 0x40d   : > { %1850 = vmatmul.mubr.msk.f32.gmra.mrb[20].mxu0 %vm1128_vm2, %v2158_v41  ;;  %2048 = vrcp.f32 %v788_v16  ;;  %vm1138_vm3 = vcmp.eq.s32.totalorder %v3159_v57, %v1122_v19 }
 0x40e   : > { %1865 = vmatmul.mubr.msk.f32.gmra.mrb[8].mxu1 %vm1138_vm3, %v2158_v41 }
 0x40f   : > { %v790_v9 = vpop.xlane.xlu1 %789 }
 0x410   : > { %2050 = vrcp.f32 %v790_v9  ;;  %v792_v13 = vpop.xlane.xlu0 %791 }
 0x411   : > { %2052 = vrcp.f32 %v792_v13  ;;  %v3163_v13 = vld [vmem:[#allocation7_spill] sm:$0xff] }
 0x413   : > { %v794_v43 = vpop.xlane.xlu1 %793 }
 0x414   : > { %2054 = vrcp.f32 %v794_v43  ;;  %v796_v44 = vpop.xlane.xlu0 %795 }
 0x415   : > { %2056 = vrcp.f32 %v796_v44 }
 0x416   : > { %v2047_v53 = vpop.eup %2046 }
 0x417   : > { %v818_v47 = vmul.f32 %v2047_v53, %v2809_v10  ;;  %v798_v23 = vpop.xlane.xlu1 %797  ;;  %v2049_v62 = vpop.eup %2048 }
 0x418   : > { %2058 = vrcp.f32 %v798_v23  ;;  %v820_v57 = vmul.f32 %v2049_v62, %v2813_v18  ;;  %v800_v41 = vpop.xlane.xlu0 %799 }
 0x419   : > { %849 = vst [vmem:[%s2923_s8] sm:$0xff] %v818_v47  ;;  %2060 = vrcp.f32 %v800_v41 }
 0x41a   : > { %v2051_v25 = vpop.eup %2050  ;;  %850 = vst [vmem:[%s2923_s8 + $0x8] sm:$0xff] %v820_v57 }
 0x41b   : > { %v822_v63 = vmul.f32 %v2051_v25, %v2818_v30  ;;  %v802_v10 = vpop.xlane.xlu1 %801  ;;  %v2053_v26 = vpop.eup %2052 }
 0x41c   : > { %2062 = vrcp.f32 %v802_v10  ;;  %v824_v49 = vmul.f32 %v2053_v26, %v2823_v27  ;;  %v804_v20 = vpop.xlane.xlu0 %803 }
 0x41d   : > { %851 = vst [vmem:[%s2923_s8 + $0x10] sm:$0xff] %v822_v63  ;;  %2064 = vrcp.f32 %v804_v20  ;;  %v3164_v63 = vld [vmem:[#allocation10_spill] sm:$0xff] }
 0x41e   : > { %v2055_v59 = vpop.eup %2054  ;;  %852 = vst [vmem:[%s2923_s8 + $0x18] sm:$0xff] %v824_v49  ;;  %v3165_v49 = vld [vmem:[#allocation9_spill] sm:$0xff] }
 0x41f   : > { %v826_v18 = vmul.f32 %v2055_v59, %v2829_v38  ;;  %v806_v61 = vpop.xlane.xlu1 %805  ;;  %v2057_v24 = vpop.eup %2056 }
 0x420   : > { %2066 = vrcp.f32 %v806_v61  ;;  %v828_v30 = vmul.f32 %v2057_v24, %v2834_v51  ;;  %v808_v60 = vpop.xlane.xlu0 %807  ;;  %v3166_v24 = vld [vmem:[#allocation12_spill] sm:$0xff] }
 0x421   : > { %853 = vst [vmem:[%s2923_s8 + $0x20] sm:$0xff] %v826_v18  ;;  %2068 = vrcp.f32 %v808_v60 }
 0x422   : > { %v2059_v31 = vpop.eup %2058  ;;  %854 = vst [vmem:[%s2923_s8 + $0x28] sm:$0xff] %v828_v30 }
 0x423   : > { %v830_v27 = vmul.f32 %v2059_v31, %v2839_v39  ;;  %v810_v32 = vpop.xlane.xlu1 %809  ;;  %v2061_v50 = vpop.eup %2060 }
 0x424   : > { %2070 = vrcp.f32 %v810_v32  ;;  %v832_v38 = vmul.f32 %v2061_v50, %v2844_v42  ;;  %v812_v34 = vpop.xlane.xlu0 %811  ;;  %v3167_v32 = vld [vmem:[#allocation11_spill] sm:$0xff] }
 0x425   : > { %855 = vst [vmem:[%s2923_s8 + $0x30] sm:$0xff] %v830_v27  ;;  %2072 = vrcp.f32 %v812_v34 }
 0x426   : > { %v2063_v14 = vpop.eup %2062  ;;  %856 = vst [vmem:[%s2923_s8 + $0x38] sm:$0xff] %v832_v38 }
 0x427   : > { %v834_v51 = vmul.f32 %v2063_v14, %v2847_v2  ;;  %v814_v36 = vpop.xlane.xlu1 %813  ;;  %v2065_v33 = vpop.eup %2064  ;;  %v3168_v14 = vld [vmem:[#allocation14_spill] sm:$0xff] }
 0x428   : > { %2074 = vrcp.f32 %v814_v36  ;;  %v836_v39 = vmul.f32 %v2065_v33, %v2850_v15  ;;  %v816_v12 = vpop.xlane.xlu0 %815 }
 0x429   : > { %857 = vst [vmem:[%s2923_s8 + $0x40] sm:$0xff] %v834_v51  ;;  %2076 = vrcp.f32 %v816_v12 }
 0x42a   : > { %v2067_v40 = vpop.eup %2066  ;;  %858 = vst [vmem:[%s2923_s8 + $0x48] sm:$0xff] %v836_v39  ;;  %v3169_v39 = vld [vmem:[#allocation13_spill] sm:$0xff] }
 0x42b   : > { %v838_v42 = vmul.f32 %v2067_v40, %v2853_v58  ;;  %v2069_v54 = vpop.eup %2068 }
 0x42c   : > { %v840_v2 = vmul.f32 %v2069_v54, %v2856_v8  ;;  %v3170_v54 = vld [vmem:[#allocation16_spill] sm:$0xff] }
 0x42d   : > { %859 = vst [vmem:[%s2923_s8 + $0x50] sm:$0xff] %v838_v42 }
 0x42e   : > { %v2071_v55 = vpop.eup %2070  ;;  %860 = vst [vmem:[%s2923_s8 + $0x58] sm:$0xff] %v840_v2 }
 0x42f   : > { %v842_v4 = vmul.f32 %v2071_v55, %v2859_v3  ;;  %v2073_v1 = vpop.eup %2072 }
 0x430   : > { %v844_v15 = vmul.f32 %v2073_v1, %v2862_v22  ;;  %v3171_v1 = vld [vmem:[#allocation15_spill] sm:$0xff] }
 0x431   : > { %861 = vst [vmem:[%s2923_s8 + $0x60] sm:$0xff] %v842_v4 }
 0x432   : > { %v2075_v28 = vpop.eup %2074  ;;  %862 = vst [vmem:[%s2923_s8 + $0x68] sm:$0xff] %v844_v15 }
 0x433   : > { %v846_v48 = vmul.f32 %v2075_v28, %v2865_v7  ;;  %v2077_v17 = vpop.eup %2076 }
 0x434   : > { %v848_v58 = vmul.f32 %v2077_v17, %v2868_v45  ;;  %v3172_v17 = vld [vmem:[#allocation18_spill] sm:$0xff] }
 0x435   : > { %863 = vst [vmem:[%s2923_s8 + $0x70] sm:$0xff] %v846_v48 }
 0x436   : > { %864 = vst [vmem:[%s2923_s8 + $0x78] sm:$0xff] %v848_v58 }
 0x4a9   : > { %v1845_v5 = vpop.f32.mrb[16].mxu0 }
 0x4aa   : > { %v1369_v8 = vsub.f32 %v3160_v21, %v1845_v5  ;;  %v1253_v6 = vpop.f32.mrb[17].mxu0 }
 0x4ab   : > { %v1368_v37 = vsub.f32 %v3161_v0, %v1253_v6  ;;  %1332 = vxpose.xlu1.b32.start [1/16] (narrow) %v1253_v6, 32 }
 0x4ac   : > { %v1385_v3 = vmul.f32 %v1369_v8, %v1369_v8  ;;  %v3173_v8 = vld [vmem:[#allocation17_spill] sm:$0xff] }
 0x4ad   : > { %v1384_v29 = vmul.f32 %v1368_v37, %v1368_v37 }
 0x4ae   : > { %v1403_v22 = vsel %vm372_vm0, %v1385_v3, 0.0  ;;  %v3174_v3 = vld [vmem:[#allocation19_spill] sm:$0xff] }
 0x4af   : > { %1333 = vxpose.xlu1.b32.cont [2/16] (narrow) %v1845_v5, 32  ;;  %1404 = vadd.xlane.f32.xlu0 %v1403_v22  ;;  %v1400_v7 = vsel %vm372_vm0, %v1384_v29, 0.0 }
 0x4b3   : > { %1401 = vadd.xlane.f32.xlu0 %v1400_v7  ;;  %v3175_v7 = vld [vmem:[#allocation20_spill] sm:$0xff] }
 0x4c1   : > { %v1854_v56 = vpop.f32.mrb[0].mxu1 }
 0x4c2   : > { %v1283_v52 = vpop.f32.mrb[1].mxu1  ;;  %v1375_v30 = vsub.f32 %v3166_v24, %v1854_v56 }
 0x4c3   : > { %v1374_v50 = vsub.f32 %v3167_v32, %v1283_v52 }
 0x4c4   : > { %v1391_v27 = vmul.f32 %v1375_v30, %v1375_v30 }
 0x4c5   : > { %v1390_v34 = vmul.f32 %v1374_v50, %v1374_v50 }
 0x4c6   : > { %v1421_v36 = vsel %vm372_vm0, %v1391_v27, 0.0 }
 0x4c7   : > { %v1418_v40 = vsel %vm372_vm0, %v1390_v34, 0.0 }
 0x4c9   : > { %v1857_v45 = vpop.f32.mrb[2].mxu1 }
 0x4ca   : > { %v1293_v35 = vpop.f32.mrb[3].mxu1  ;;  %v1377_v51 = vsub.f32 %v3168_v14, %v1857_v45 }
 0x4cb   : > { %v1376_v12 = vsub.f32 %v3169_v39, %v1293_v35 }
 0x4cc   : > { %v1393_v33 = vmul.f32 %v1377_v51, %v1377_v51 }
 0x4cd   : > { %v1392_v42 = vmul.f32 %v1376_v12, %v1376_v12 }
 0x4ce   : > { %v1427_v55 = vsel %vm372_vm0, %v1393_v33, 0.0 }
 0x4cf   : > { %v1424_v28 = vsel %vm372_vm0, %v1392_v42, 0.0 }
 0x4d0   : > { %v1848_v11 = vpop.f32.mrb[18].mxu0 }
 0x4d1   : > { %v1371_v19 = vsub.f32 %v3162_v46, %v1848_v11  ;;  %v1263_v16 = vpop.f32.mrb[19].mxu0  ;;  %v1860_v9 = vpop.f32.mrb[4].mxu1 }
 0x4d2   : > { %v1370_v43 = vsub.f32 %v3163_v13, %v1263_v16  ;;  %1334 = vxpose.xlu1.b32.cont [3/16] (narrow) %v1263_v16, 32  ;;  %v1303_v44 = vpop.f32.mrb[5].mxu1  ;;  %v1379_v2 = vsub.f32 %v3170_v54, %v1860_v9 }
 0x4d3   : > { %v1387_v53 = vmul.f32 %v1371_v19, %v1371_v19  ;;  %v1378_v15 = vsub.f32 %v3171_v1, %v1303_v44 }
 0x4d4   : > { %v1386_v47 = vmul.f32 %v1370_v43, %v1370_v43  ;;  %v1395_v4 = vmul.f32 %v1379_v2, %v1379_v2 }
 0x4d5   : > { %v1409_v23 = vsel %vm372_vm0, %v1387_v53, 0.0  ;;  %v1394_v48 = vmul.f32 %v1378_v15, %v1378_v15 }
 0x4d6   : > { %1335 = vxpose.xlu1.b32.cont [4/16] (narrow) %v1848_v11, 32  ;;  %1410 = vadd.xlane.f32.xlu0 %v1409_v23  ;;  %v1406_v57 = vsel %vm372_vm0, %v1386_v47, 0.0  ;;  %v1433_v5 = vsel %vm372_vm0, %v1395_v4, 0.0 }
 0x4d7   : > { %v1430_v0 = vsel %vm372_vm0, %v1394_v48, 0.0 }
 0x4d9   : > { %v1863_v62 = vpop.f32.mrb[6].mxu1 }
 0x4da   : > { %1407 = vadd.xlane.f32.xlu0 %v1406_v57  ;;  %v1313_v41 = vpop.f32.mrb[7].mxu1  ;;  %v1381_v58 = vsub.f32 %v3172_v17, %v1863_v62 }
 0x4db   : > { %v1380_v6 = vsub.f32 %v3173_v8, %v1313_v41 }
 0x4dc   : > { %v1397_v21 = vmul.f32 %v1381_v58, %v1381_v58 }
 0x4dd   : > { %v1396_v37 = vmul.f32 %v1380_v6, %v1380_v6 }
 0x4de   : > { %v1439_v22 = vsel %vm372_vm0, %v1397_v21, 0.0 }
 0x4e0   : > { %v1851_v25 = vpop.f32.mrb[20].mxu0 }
 0x4e1   : > { %v1373_v10 = vsub.f32 %v3164_v63, %v1851_v25  ;;  %v1273_v26 = vpop.f32.mrb[21].mxu0  ;;  %v1866_v59 = vpop.f32.mrb[8].mxu1 }
 0x4e2   : > { %v1372_v20 = vsub.f32 %v3165_v49, %v1273_v26  ;;  %1336 = vxpose.xlu1.b32.cont [5/16] (narrow) %v1273_v26, 32  ;;  %v1323_v61 = vpop.f32.mrb[9].mxu1 }
 0x4e3   : > { %v1389_v18 = vmul.f32 %v1373_v10, %v1373_v10  ;;  %v1382_v29 = vsub.f32 %v3174_v3, %v1323_v61 }
 0x4e4   : > { %v1388_v60 = vmul.f32 %v1372_v20, %v1372_v20 }
 0x4e5   : > { %v1415_v31 = vsel %vm372_vm0, %v1389_v18, 0.0 }
 0x4e6   : > { %1337 = vxpose.xlu1.b32.cont [6/16] (narrow) %v1851_v25, 32  ;;  %1416 = vadd.xlane.f32.xlu0 %v1415_v31  ;;  %v1412_v38 = vsel %vm372_vm0, %v1388_v60, 0.0 }
 0x4ea   : > { %1413 = vadd.xlane.f32.xlu0 %v1412_v38  ;;  %1338 = vxpose.xlu1.b32.cont [7/16] (narrow) %v1283_v52, 32  ;;  %v1398_v52 = vmul.f32 %v1382_v29, %v1382_v29 }
 0x4ec   : > { %v1442_v11 = vsel %vm372_vm0, %v1398_v52, 0.0 }
 0x4ee   : > { %1422 = vadd.xlane.f32.xlu0 %v1421_v36  ;;  %1339 = vxpose.xlu1.b32.cont [8/16] (narrow) %v1854_v56, 32  ;;  %v1383_v56 = vsub.f32 %v3175_v7, %v1866_v59 }
 0x4f2   : > { %1419 = vadd.xlane.f32.xlu0 %v1418_v40  ;;  %1340 = vxpose.xlu1.b32.cont [9/16] (narrow) %v1293_v35, 32  ;;  %v1399_v35 = vmul.f32 %v1383_v56, %v1383_v56 }
 0x4f4   : > { %v1445_v46 = vsel %vm372_vm0, %v1399_v35, 0.0 }
 0x4f6   : > { %1428 = vadd.xlane.f32.xlu0 %v1427_v55  ;;  %1341 = vxpose.xlu1.b32.cont [10/16] (narrow) %v1857_v45, 32  ;;  %v1436_v45 = vsel %vm372_vm0, %v1396_v37, 0.0 }
 0x4fa   : > { %1425 = vadd.xlane.f32.xlu0 %v1424_v28  ;;  %1342 = vxpose.xlu1.b32.cont [11/16] (narrow) %v1303_v44, 32 }
 0x4fe   : > { %1434 = vadd.xlane.f32.xlu0 %v1433_v5  ;;  %1343 = vxpose.xlu1.b32.cont [12/16] (narrow) %v1860_v9, 32 }
 0x502   : > { %1431 = vadd.xlane.f32.xlu0 %v1430_v0  ;;  %1344 = vxpose.xlu1.b32.cont [13/16] (narrow) %v1313_v41, 32 }
 0x506   : > { %1440 = vadd.xlane.f32.xlu0 %v1439_v22  ;;  %1345 = vxpose.xlu1.b32.cont [14/16] (narrow) %v1863_v62, 32 }
 0x50a   : > { %1437 = vadd.xlane.f32.xlu0 %v1436_v45  ;;  %1346 = vxpose.xlu1.b32.cont [15/16] (narrow) %v1323_v61, 32 }
 0x50e   : > { %1347 = vxpose.xlu1.b32.end [16/16] (narrow) %v1866_v59, 32  ;;  %1443 = vadd.xlane.f32.xlu0 %v1442_v11 }
 0x512   : > { %1446 = vadd.xlane.f32.xlu0 %v1445_v46 }
 0x513   : > { %2091 = shalt.err (!%p2088_p5)
}
 0x514   : > { %s2092_s28 = scalar_lea.hbm %s2993_s17, 2048  ;;  %s2096_s13 = scalar_lea.hbm %s3093_s5, 4096 }
 0x515   : > { %p2093_p6 = scmp.ne.s32.totalorder %s2993_s17, %s2092_s28  ;;  %p2097_p10 = scmp.lt.u32.totalorder %s2993_s17, %s3093_s5 }
 0x516   : > { %p2098_p11 = scmp.lt.u32.totalorder %s2096_s13, %s2092_s28  ;;  %p2100_p13 = scmp.lt.u32.totalorder %s2092_s28, %s2993_s17 }
 0x517   : > { %p2094_p7 = pnand %p2093_p6, %p2237_p4 }
 0x518   : > { %p2099_p12 = por %p2098_p11, %p2097_p10 }
 0x519   : > { %p2095_p9 = pneg %p2094_p7 }
 0x51a   : > { %p2101_p0 = por %p2100_p13, %p2099_p12 }
 0x51c   : > { %p2102_p1 = pnand %p2101_p0, %p2095_p9 }
 0x51e   : > { %2105 = shalt.err (!%p2102_p1)
}
 0x51f   : > { %s2160_s19 = smov 128   ;;  %s2161_s24 = smov 8   ;;  %vm1448_vm0 = vcmask 7168  }
 0x520   : > { %1923 = dma.vmem_to_hbm [thread:$0]  (%p2237_p4), %s2995_s14, 2048, %s2993_s17, %s2999_s18, %s2160_s19, %s2160_s19, %s2161_s24  }
 0x521   : > { %s1725_s20 = sshll.u32 %s2254_s11, 7  ;;  %s308_s17 = scalar_lea.vmem %s3092_s4, %s1723_s12 }
 0x522   : > { %s3027_s8 = scalar_lea.vmem %s3094_s6, %s1725_s20 }
 0x53c   : > { %v1405_v19 = vpop.xlane.xlu0 %1404 }
 0x53d   : > { %1450 = vst.msk [vmem:[%s3027_s8 + $0x8] sm:$0xff] %vm1448_vm0, %v1405_v19 }
 0x540   : > { %v1402_v16 = vpop.xlane.xlu0 %1401 }
 0x541   : > { %1449 = vst.msk [vmem:[%s3027_s8] sm:$0xff] %vm1448_vm0, %v1402_v16 }
 0x552   : > { %v1348_v9 = vpop.trf.xlu1 }
 0x553   : > { %1364 = vst [vmem:[%s308_s17] sm:$0xff] %v1348_v9 }
 0x556   : > { %v1349_v13 = vpop.trf.xlu1 }
 0x557   : > { %1365 = vst [vmem:[%s308_s17 + $0x8] sm:$0xff] %v1349_v13 }
 0x55a   : > { %v1350_v43 = vpop.trf.xlu1 }
 0x55b   : > { %1366 = vst [vmem:[%s308_s17 + $0x10] sm:$0xff] %v1350_v43 }
 0x55e   : > { %v1351_v44 = vpop.trf.xlu1 }
 0x55f   : > { %1367 = vst [vmem:[%s308_s17 + $0x18] sm:$0xff] %v1351_v44 }
 0x563   : > { %v1411_v53 = vpop.xlane.xlu0 %1410 }
 0x564   : > { %1452 = vst.msk [vmem:[%s3027_s8 + $0x18] sm:$0xff] %vm1448_vm0, %v1411_v53 }
 0x567   : > { %v1408_v47 = vpop.xlane.xlu0 %1407 }
 0x568   : > { %1451 = vst.msk [vmem:[%s3027_s8 + $0x10] sm:$0xff] %vm1448_vm0, %v1408_v47 }
 0x573   : > { %v1417_v23 = vpop.xlane.xlu0 %1416 }
 0x574   : > { %1454 = vst.msk [vmem:[%s3027_s8 + $0x28] sm:$0xff] %vm1448_vm0, %v1417_v23 }
 0x577   : > { %v1414_v62 = vpop.xlane.xlu0 %1413 }
 0x578   : > { %1453 = vst.msk [vmem:[%s3027_s8 + $0x20] sm:$0xff] %vm1448_vm0, %v1414_v62 }
 0x57b   : > { %v1423_v57 = vpop.xlane.xlu0 %1422 }
 0x57c   : > { %1456 = vst.msk [vmem:[%s3027_s8 + $0x38] sm:$0xff] %vm1448_vm0, %v1423_v57 }
 0x57f   : > { %v1420_v41 = vpop.xlane.xlu0 %1419 }
 0x580   : > { %1455 = vst.msk [vmem:[%s3027_s8 + $0x30] sm:$0xff] %vm1448_vm0, %v1420_v41 }
 0x583   : > { %v1429_v25 = vpop.xlane.xlu0 %1428 }
 0x584   : > { %1458 = vst.msk [vmem:[%s3027_s8 + $0x48] sm:$0xff] %vm1448_vm0, %v1429_v25 }
 0x587   : > { %v1426_v63 = vpop.xlane.xlu0 %1425 }
 0x588   : > { %1457 = vst.msk [vmem:[%s3027_s8 + $0x40] sm:$0xff] %vm1448_vm0, %v1426_v63 }
 0x58b   : > { %v1435_v10 = vpop.xlane.xlu0 %1434 }
 0x58c   : > { %1460 = vst.msk [vmem:[%s3027_s8 + $0x58] sm:$0xff] %vm1448_vm0, %v1435_v10 }
 0x58f   : > { %v1432_v26 = vpop.xlane.xlu0 %1431 }
 0x590   : > { %1459 = vst.msk [vmem:[%s3027_s8 + $0x50] sm:$0xff] %vm1448_vm0, %v1432_v26 }
 0x593   : > { %v1441_v49 = vpop.xlane.xlu0 %1440 }
 0x594   : > { %1462 = vst.msk [vmem:[%s3027_s8 + $0x68] sm:$0xff] %vm1448_vm0, %v1441_v49 }
 0x597   : > { %v1438_v20 = vpop.xlane.xlu0 %1437 }
 0x598   : > { %1461 = vst.msk [vmem:[%s3027_s8 + $0x60] sm:$0xff] %vm1448_vm0, %v1438_v20 }
 0x59b   : > { %v1444_v59 = vpop.xlane.xlu0 %1443 }
 0x59c   : > { %1463 = vst.msk [vmem:[%s3027_s8 + $0x70] sm:$0xff] %vm1448_vm0, %v1444_v59 }
 0x59f   : > { %v1447_v18 = vpop.xlane.xlu0 %1446 }
 0x5a0   : > { %1464 = vst.msk [vmem:[%s3027_s8 + $0x78] sm:$0xff] %vm1448_vm0, %v1447_v18 }
 0x5a1 PF: > { %p1929_p4 = scmp.ge.s32.totalorder %s2156_s26, 2  ;;  %s1531_s11 = sand.u32 1, %s2136_s21  }
 0x5a2   : > { %s1532_s12 = scalar_lea.sflag [#allocation3], %s1531_s11 }
 0x5a3   : > { %p1926_p2 = pnand %p1929_p4, %p2244_p8 }
 0x5a5   : > { %2131 = dma.done.wait (!%p1926_p2), %s1532_s12, 2048  }
 0x5a6   : > { %2133 = vsyncadd (!%p1926_p2), %s1532_s12, 4294965248  ;;  %s20_s26 = sadd.s32 1, %s2156_s26   ;;  %s3176_s21 = smov %s2140_s22 }
 0x5a7   : > { %p17_p3 = scmp.ge.s32.totalorder %s20_s26, 4   ;;  %s3177_s22 = smov %s2144_s23 }
 0x5a8   : > { %s3178_s23 = smov %s2250_s10  ;;  %s3179_s24 = smov %s2152_s25 }
 0x5a9   : > { %s3180_s25 = smov %s3182_s29  ;;  %19 = sbr.rel (!%p17_p3) target bundleno = 4 (0x4), region = 95 }
 0x5b0   :  { %1549 = vsyncpa [#allocation3], 1 }
 0x5b1   :  { %1551 = vsyncpa [#allocation3 + $0x1], 1 }

</bundles_post_ra>
